<compile_context>
chip_gen: v6e
topology: v6e:2x2x1
jax: 0.10.0
libtpu: 0.0.40
codegen_flags: <defaults>
</compile_context>

<pallas_src>
import math

import jax
import jax.numpy as jnp
from jax.experimental import pallas as pl
from jax.experimental.pallas import tpu as pltpu


def _make_layer_kernel(num_heads, head_dim, kernel_size, eps=1e-12):
    """num_heads here is the *reduced* head count (orig_heads // head_ratio)."""
    A = num_heads * head_dim          # all_head_size
    K = kernel_size
    pad = K // 2                      # odd K only (asserted in wrapper)
    inv_sqrt_dh = 1.0 / math.sqrt(head_dim)
    inv_sqrt2 = 1.0 / math.sqrt(2.0)
    pair_heads = (num_heads % 2 == 0)

    def kernel(x_ref, mask_ref,
               wq, wk, wv, pww, wck, wco, wo, wi, wo2,          # bf16 matmul weights
               dww, wblk, wexp,                                 # f32 taps + bf16 0/1 structure mats
               ba_ref, bh_ref, bck_ref, bi_ref,                 # f32 packed biases / LN vectors
               out_ref,
               cat_ref, q3_ref, k3_ref, v3_ref):                # VMEM scratch
        xb = x_ref[0]                                 # (S, H) bf16 streamed activation
        x = xb.astype(jnp.float32)
        addm = mask_ref[0].astype(jnp.float32)        # (1, S) additive attention mask
        S = x.shape[0]

        ba = ba_ref[...]                              # (5, A): bq, bk, bv, sepb, bco
        bh = bh_ref[...]                              # (6, H): bo, ln1g, ln1b, bo2, ln2g, ln2b

        def mm(a_bf16, w_ref):                        # bf16 MXU matmul, f32 accumulate
            return jnp.dot(a_bf16, w_ref[...], preferred_element_type=jnp.float32)

        q = mm(xb, wq) + ba[0:1, :]                   # (S, A) f32
        k = mm(xb, wk) + ba[1:2, :]
        v = mm(xb, wv) + ba[2:3, :]

        # repack q/k/v once into (heads, S, dh) bf16 views for batched attention
        for h in range(num_heads):
            lo, hi = h * head_dim, (h + 1) * head_dim
            q3_ref[h] = q[:, lo:hi].astype(jnp.bfloat16)
            k3_ref[h] = k[:, lo:hi].astype(jnp.bfloat16)
            v3_ref[h] = v[:, lo:hi].astype(jnp.bfloat16)

        # shifted(a, j)[t] == a[t + j - pad, :] with zeros outside [0, S):
        # XLU roll + edge mask.  The K masks are built ONCE and reused by both
        # tap loops (JAX does not CSE the iota / compare / broadcast chain).
        row = jax.lax.broadcasted_iota(jnp.int32, (S, 1), 0)
        edge_mask = []
        for j in range(K):
            d = j - pad
            if d == 0:
                edge_mask.append(None)
            elif d > 0:
                edge_mask.append(row < (S - d))
            else:
                edge_mask.append(row >= (-d))

        def shifted(a, j):
            d = j - pad
            if d == 0:
                return a
            r = pltpu.roll(a, shift=(-d) % S, axis=0)
            return jnp.where(edge_mask[j], r, 0.0)

        # ---- SeparableConv1D (key_conv_attn_layer): depthwise + pointwise ----
        dww_a = dww[...]                              # (K, H) f32
        dwy = x * dww_a[pad:pad + 1, :]               # center tap (no shift)
        for j in range(K):                            # static tap loop
            if j == pad:
                continue
            dwy = dwy + shifted(x, j) * dww_a[j:j + 1, :]
        sep = mm(dwy.astype(jnp.bfloat16), pww) + ba[3:4, :]          # (S, A)

        # ---- span dynamic conv kernels: per-head softmax over K taps (hoisted) ----
        conv_attn = sep * q
        lg = mm(conv_attn.astype(jnp.bfloat16), wck) + bck_ref[...]   # (S, heads*K)
        # row-global max subtraction leaves every per-head softmax unchanged
        lg = lg - jnp.max(lg, axis=-1, keepdims=True)
        e = jnp.exp(lg)
        # per-head denominator via exact 0/1 block-diagonal matmul (bf16 operands)
        denom = jnp.dot(e.astype(jnp.bfloat16), wblk[...],
                        preferred_element_type=jnp.float32)
        denom = jnp.maximum(denom, 1e-30)             # guard fully-underflowed heads
        pk = e * pl.reciprocal(denom, approx=True)    # per-head normalized tap weights
        pk_b = pk.astype(jnp.bfloat16)

        # ---- conv_out_layer projection + K-tap weighted "unfold" ----
        # tap weights are scattered onto head_dim lanes one tap at a time with a
        # small exact 0/1 bf16 matmul, so the (S, K*A) tensor is never materialized.
        co = mm(xb, wco) + ba[4:5, :]                 # (S, A)
        wexp_a = wexp[...]                            # (hk, K*A) bf16
        lanes_c = jnp.dot(pk_b, wexp_a[:, pad * A:(pad + 1) * A],
                          preferred_element_type=jnp.float32)
        conv_full = co * lanes_c
        for j in range(K):
            if j == pad:
                continue
            lanes_j = jnp.dot(pk_b, wexp_a[:, j * A:(j + 1) * A],
                              preferred_element_type=jnp.float32)
            conv_full = conv_full + shifted(co, j) * lanes_j
        cat_ref[:, A:2 * A] = conv_full.astype(jnp.bfloat16)

        # ---- reduced-head self attention: single batched einsum over all heads ----
        s = jnp.einsum("hqd,hkd->hqk", q3_ref[...], k3_ref[...],
                       preferred_element_type=jnp.float32)            # (heads, S, S)
        s = s * inv_sqrt_dh + addm                    # mask broadcast over heads, queries
        s = s - jnp.max(s, axis=-1, keepdims=True)
        p = jnp.exp(s)
        p = p * pl.reciprocal(jnp.sum(p, axis=-1, keepdims=True), approx=True)
        ctx = jnp.einsum("hqk,hkd->hqd", p.astype(jnp.bfloat16), v3_ref[...],
                         preferred_element_type=jnp.float32)          # (heads, S, dh)

        # write attention contexts as head-pair (2*dh lane) slabs where possible
        if pair_heads:
            for i in range(num_heads // 2):
                lo = 2 * i * head_dim
                blk = jnp.concatenate([ctx[2 * i], ctx[2 * i + 1]], axis=-1)
                cat_ref[:, lo:lo + 2 * head_dim] = blk.astype(jnp.bfloat16)
        else:
            for h in range(num_heads):
                cat_ref[:, h * head_dim:(h + 1) * head_dim] = ctx[h].astype(jnp.bfloat16)

        # cat([attn ctx, conv out]) @ Wo as ONE bf16 (S, 2A) x (2A, H) MXU matmul
        attn_out = mm(cat_ref[...], wo) + bh[0:1, :]

        def layer_norm(y, g, b):
            mu = jnp.mean(y, axis=-1, keepdims=True)
            var = jnp.mean((y - mu) ** 2, axis=-1, keepdims=True)
            return (y - mu) * jax.lax.rsqrt(var + eps) * g + b

        h1 = layer_norm(attn_out + x, bh[1:2, :], bh[2:3, :])

        inter = mm(h1.astype(jnp.bfloat16), wi) + bi_ref[...]
        # HF "gelu" is the exact-erf form
        inter = 0.5 * inter * (1.0 + jax.lax.erf(inter * inv_sqrt2))
        ffn = mm(inter.astype(jnp.bfloat16), wo2) + bh[3:4, :]
        out = layer_norm(ffn + h1, bh[4:5, :], bh[5:6, :])

        out_ref[0] = out.astype(out_ref.dtype)

    return kernel


def convbert_layer(x_bf16, ext_mask, params, *, num_heads, head_dim, kernel_size):
    """One ConvBert encoder layer.  x_bf16: (B,S,H) bf16, ext_mask: (B,1,S) additive f32."""
    B, S, H = x_bf16.shape
    A = num_heads * head_dim
    K = kernel_size
    assert K % 2 == 1, "HF ConvBert padding semantics reproduced for odd kernel_size only"
    hk = num_heads * K
    hidden = params["wi"].shape[1]

    # big matmul operands in bf16 (halves weight DMA + VMEM; MXU-native dtype)
    bf = lambda w: w.astype(jnp.bfloat16)

    # exact 0/1 structure matrices (exactly representable in bf16):
    #   wblk: block-diagonal ones -> per-head tap-softmax denominator broadcast
    #   wexp: scatter pk[t, h*K+j] onto lanes j*A + h*head_dim + d (sliced per tap in-kernel)
    rows = jnp.arange(hk)
    h_idx, j_idx = rows // K, rows % K
    wblk = (h_idx[:, None] == h_idx[None, :]).astype(jnp.bfloat16)
    col = jnp.arange(K * A)
    j_col, h_col = col // A, (col % A) // head_dim
    wexp = ((j_col[None, :] == j_idx[:, None]) &
            (h_col[None, :] == h_idx[:, None])).astype(jnp.bfloat16)

    # pack the small bias / LayerNorm vectors into two stacked inputs
    bias_a = jnp.concatenate([params["bq"], params["bk"], params["bv"],
                              params["sepb"], params["bco"]], axis=0)          # (5, A)
    bias_h = jnp.concatenate([params["bo"], params["ln1g"], params["ln1b"],
                              params["bo2"], params["ln2g"], params["ln2b"]], axis=0)  # (6, H)

    weights = [bf(params["wq"]), bf(params["wk"]), bf(params["wv"]),
               bf(params["pww"]), bf(params["wck"]), bf(params["wco"]),
               bf(params["wo"]), bf(params["wi"]), bf(params["wo2"]),
               params["dww"], wblk, wexp,
               bias_a, bias_h, params["bck"], params["bi"]]

    def full_spec(a):
        nd = a.ndim
        return pl.BlockSpec(a.shape, lambda b, _nd=nd: (0,) * _nd)

    in_specs = [pl.BlockSpec((1, S, H), lambda b: (b, 0, 0)),
                pl.BlockSpec((1, 1, S), lambda b: (b, 0, 0))]
    in_specs += [full_spec(w) for w in weights]

    # ---- generation-aware scoped-VMEM budget ----
    try:
        vmem_cap = int(pltpu.get_tpu_info().vmem_capacity_bytes)
    except Exception:
        vmem_cap = 64 * 2**20
    if vmem_cap <= (64 << 20):                      # 64 MiB parts (v7x): ~16 MiB headroom
        ceiling = vmem_cap - (16 << 20)
    else:                                           # 128 MiB parts (v5e / v6e)
        ceiling = min(vmem_cap - (28 << 20), 100 << 20)
    ceiling = max(ceiling, 32 << 20)

    weight_bytes = sum(int(w.size) * w.dtype.itemsize for w in weights)
    act_bytes = (4 * S * (4 * H + 6 * A + 3 * hk + 2 * hidden)      # f32 temporaries
                 + 6 * num_heads * S * S                            # f32 scores + bf16 probs
                 + 2 * S * (2 * A + 3 * A)                          # bf16 scratch (cat, q3/k3/v3)
                 + 4 * 2 * S * H)                                   # double-buffered bf16 act blocks
    budget = 2 * weight_bytes + act_bytes + (4 << 20)
    vmem_limit = int(min(max(32 << 20, budget), ceiling))

    kernel = _make_layer_kernel(num_heads, head_dim, K)

    # TODO(synk): for ConvBert-base sequence lengths (S >= 512) add an S-tile grid axis
    # (flash-style online attention softmax + halo'd conv taps, K/V produced by a first
    # projection pass) so activation VMEM stops scaling as heads*S^2 and both v7x
    # TensorCores get work even at B=1; also prefetch next-layer weights via a
    # cross-pallas_call DMA future.  At the demo sizes one block per batch element is optimal.
    return pl.pallas_call(
        kernel,
        out_shape=jax.ShapeDtypeStruct((B, S, H), x_bf16.dtype),
        grid_spec=pltpu.PrefetchScalarGridSpec(
            num_scalar_prefetch=0,
            grid=(B,),
            in_specs=in_specs,
            out_specs=pl.BlockSpec((1, S, H), lambda b: (b, 0, 0)),
            scratch_shapes=[
                pltpu.VMEM((S, 2 * A), jnp.bfloat16),                 # [attn ctx | conv out]
                pltpu.VMEM((num_heads, S, head_dim), jnp.bfloat16),   # q heads view
                pltpu.VMEM((num_heads, S, head_dim), jnp.bfloat16),   # k heads view
                pltpu.VMEM((num_heads, S, head_dim), jnp.bfloat16),   # v heads view
            ],
        ),
        compiler_params=pltpu.CompilerParams(
            dimension_semantics=("parallel",),
            vmem_limit_bytes=vmem_limit),
    )(x_bf16, ext_mask, *weights)


def _extended_mask(attention_mask, dtype):
    # get_extended_attention_mask: (1 - mask) * finfo(dtype).min, kept as (B,1,S)
    ext = (1.0 - attention_mask.astype(dtype)) * jnp.finfo(dtype).min
    return ext[:, None, :]


def convbert_encoder_forward(embeddings, attention_mask, layers, *,
                             num_heads, head_dim, kernel_size):
    ext = _extended_mask(attention_mask, embeddings.dtype)
    # stream activations between layers in bf16 (halves HBM traffic and block VMEM);
    # every kernel keeps residual / LayerNorm math in f32.
    h = embeddings.astype(jnp.bfloat16)
    for p in layers:
        h = convbert_layer(h, ext, p, num_heads=num_heads, head_dim=head_dim,
                           kernel_size=kernel_size)
    return h.astype(embeddings.dtype)


# -------------------- pure-JAX f32 reference (eval mode) --------------------
def _convbert_layer_ref(x, ext_mask, p, *, num_heads, head_dim, kernel_size, eps=1e-12):
    B, S, H = x.shape
    A = num_heads * head_dim
    K = kernel_size
    pad = K // 2
    dense = lambda a, w, b: jnp.einsum("bsh,hd->bsd", a, w) + b
    q = dense(x, p["wq"], p["bq"])
    k = dense(x, p["wk"], p["bk"])
    v = dense(x, p["wv"], p["bv"])
    xp = jnp.pad(x, ((0, 0), (pad, pad), (0, 0)))
    dwy = sum(xp[:, j:j + S, :] * p["dww"][j] for j in range(K))
    sep = jnp.einsum("bsh,ha->bsa", dwy, p["pww"]) + p["sepb"]
    lg = jnp.einsum("bsa,ak->bsk", sep * q, p["wck"]) + p["bck"]
    pk = jax.nn.softmax(lg.reshape(B, S, num_heads, K), axis=-1)
    co = dense(x, p["wco"], p["bco"])
    cop = jnp.pad(co, ((0, 0), (pad, pad), (0, 0)))
    win = jnp.stack([cop[:, j:j + S, :] for j in range(K)], axis=-1)
    win = win.reshape(B, S, num_heads, head_dim, K)
    conv = jnp.einsum("bshdk,bshk->bshd", win, pk).reshape(B, S, A)
    qh = q.reshape(B, S, num_heads, head_dim)
    kh = k.reshape(B, S, num_heads, head_dim)
    vh = v.reshape(B, S, num_heads, head_dim)
    sc = jnp.einsum("bqhd,bkhd->bhqk", qh, kh) / math.sqrt(head_dim)
    sc = sc + ext_mask[:, :, None, :]
    pr = jax.nn.softmax(sc, axis=-1)
    ctx = jnp.einsum("bhqk,bkhd->bqhd", pr, vh).reshape(B, S, A)
    cat = jnp.concatenate([ctx, conv], axis=-1)
    attn_out = jnp.einsum("bsc,ch->bsh", cat, p["wo"]) + p["bo"]

    def ln(y, g, b):
        mu = y.mean(-1, keepdims=True)
        var = ((y - mu) ** 2).mean(-1, keepdims=True)
        return (y - mu) / jnp.sqrt(var + eps) * g + b

    h1 = ln(attn_out + x, p["ln1g"], p["ln1b"])
    inter = jnp.einsum("bsh,hm->bsm", h1, p["wi"]) + p["bi"]
    inter = 0.5 * inter * (1.0 + jax.lax.erf(inter / math.sqrt(2.0)))
    ffn = jnp.einsum("bsm,mh->bsh", inter, p["wo2"]) + p["bo2"]
    return ln(ffn + h1, p["ln2g"], p["ln2b"])


def convbert_encoder_reference(embeddings, attention_mask, layers, *,
                               num_heads, head_dim, kernel_size):
    ext = _extended_mask(attention_mask, embeddings.dtype)
    h = embeddings
    for p in layers:
        h = _convbert_layer_ref(h, ext, p, num_heads=num_heads, head_dim=head_dim,
                                kernel_size=kernel_size)
    return h


def init_convbert_params(key, input_dim, num_heads_orig, hidden_dim, num_layers,
                         kernel_size, head_ratio, std=0.02):
    """Deterministic synthetic parameters with the same shapes as HF ConvBert."""
    heads = num_heads_orig // head_ratio            # reduced head count
    head_dim = input_dim // num_heads_orig          # attention_head_size
    A = heads * head_dim                            # all_head_size
    K = kernel_size
    layers = []
    for _ in range(num_layers):
        key, *ks = jax.random.split(key, 13)
        nrm = lambda k, shape: jax.random.normal(k, shape, jnp.float32) * std
        zeros = lambda shape: jnp.zeros(shape, jnp.float32)
        ones = lambda shape: jnp.ones(shape, jnp.float32)
        p = {
            "wq": nrm(ks[0], (input_dim, A)), "bq": zeros((1, A)),
            "wk": nrm(ks[1], (input_dim, A)), "bk": zeros((1, A)),
            "wv": nrm(ks[2], (input_dim, A)), "bv": zeros((1, A)),
            # depthwise Conv1d(H,H,K,groups=H) weight (H,1,K) stored as (K,H)
            "dww": nrm(ks[3], (K, input_dim)),
            # pointwise Conv1d(H,A,1) weight (A,H,1) stored as (H,A)
            "pww": nrm(ks[4], (input_dim, A)),
            "sepb": zeros((1, A)),
            "wck": nrm(ks[5], (A, heads * K)), "bck": zeros((1, heads * K)),
            "wco": nrm(ks[6], (input_dim, A)), "bco": zeros((1, A)),
            "wo": nrm(ks[7], (2 * A, input_dim)), "bo": zeros((1, input_dim)),
            "ln1g": ones((1, input_dim)), "ln1b": zeros((1, input_dim)),
            "wi": nrm(ks[8], (input_dim, hidden_dim)), "bi": zeros((1, hidden_dim)),
            "wo2": nrm(ks[9], (hidden_dim, input_dim)), "bo2": zeros((1, input_dim)),
            "ln2g": ones((1, input_dim)), "ln2b": zeros((1, input_dim)),
        }
        layers.append(p)
    return layers, heads, head_dim


if __name__ == "__main__":
    # ConvBertEncoder(input_dim=32, num_heads=4, hidden_dim=64, num_layers=2,
    #                 kernel_size=7, head_ratio=2, num_groups=1), eval mode.
    # Two layers exercise the bf16 inter-layer activation streaming / error compounding.
    B, S = 2, 8
    input_dim, num_heads_orig, hidden_dim = 32, 4, 64
    num_layers, kernel_size, head_ratio = 2, 7, 2

    key = jax.random.PRNGKey(0)
    k_emb, k_par = jax.random.split(key)
    embeddings = jax.random.normal(k_emb, (B, S, input_dim), jnp.float32)
    attention_mask = jnp.ones((B, S), jnp.int32).at[1, -2:].set(0)

    layers, heads, head_dim = init_convbert_params(
        k_par, input_dim, num_heads_orig, hidden_dim, num_layers,
        kernel_size, head_ratio)

    out = convbert_encoder_forward(embeddings, attention_mask, layers,
                                   num_heads=heads, head_dim=head_dim,
                                   kernel_size=kernel_size)
    out = jax.block_until_ready(out)

    ref = convbert_encoder_reference(embeddings, attention_mask, layers,
                                     num_heads=heads, head_dim=head_dim,
                                     kernel_size=kernel_size)
    err = float(jnp.max(jnp.abs(out - ref)))

    assert out.shape == (B, S, input_dim)
    assert bool(jnp.all(jnp.isfinite(out)))
    # bf16 MXU path, bf16 streamed activations + approx reciprocal => relaxed tolerance
    assert err < 5e-2, f"max abs diff vs reference too large: {err}"
    print("KERNEL_OK")
</pallas_src>

<mosaic_0001>
module attributes {stable_mosaic.version = 11 : i64} {
  func.func @kernel(%arg0: i32, %arg1: memref<1x8x32xbf16, #tpu.memory_space<vmem>>, %arg2: memref<1x1x8xf32, #tpu.memory_space<vmem>>, %arg3: memref<32x16xbf16, #tpu.memory_space<vmem>>, %arg4: memref<32x16xbf16, #tpu.memory_space<vmem>>, %arg5: memref<32x16xbf16, #tpu.memory_space<vmem>>, %arg6: memref<32x16xbf16, #tpu.memory_space<vmem>>, %arg7: memref<16x14xbf16, #tpu.memory_space<vmem>>, %arg8: memref<32x16xbf16, #tpu.memory_space<vmem>>, %arg9: memref<32x32xbf16, #tpu.memory_space<vmem>>, %arg10: memref<32x64xbf16, #tpu.memory_space<vmem>>, %arg11: memref<64x32xbf16, #tpu.memory_space<vmem>>, %arg12: memref<7x32xf32, #tpu.memory_space<vmem>>, %arg13: memref<14x14xbf16, #tpu.memory_space<vmem>>, %arg14: memref<14x112xbf16, #tpu.memory_space<vmem>>, %arg15: memref<5x16xf32, #tpu.memory_space<vmem>>, %arg16: memref<6x32xf32, #tpu.memory_space<vmem>>, %arg17: memref<1x14xf32, #tpu.memory_space<vmem>>, %arg18: memref<1x64xf32, #tpu.memory_space<vmem>>, %arg19: memref<1x8x32xbf16, #tpu.memory_space<vmem>>, %arg20: memref<8x32xbf16, #tpu.memory_space<vmem>>, %arg21: memref<2x8x8xbf16, #tpu.memory_space<vmem>>, %arg22: memref<2x8x8xbf16, #tpu.memory_space<vmem>>, %arg23: memref<2x8x8xbf16, #tpu.memory_space<vmem>>) attributes {dimension_semantics = [#tpu.dimension_semantics<parallel>], iteration_bounds = array<i64: 2>, scalar_prefetch = 0 : i64, scratch_operands = 4 : i64, tpu.core_type = #tpu.core_type<tc>, window_params = [{transform_indices = @transform_0, window_bounds = array<i64: 1, 8, 32>}, {transform_indices = @transform_1, window_bounds = array<i64: 1, 1, 8>}, {pipeline_mode = #tpu.pipeline_mode<synchronous>, transform_indices = @transform_2, window_bounds = array<i64: 32, 16>}, {pipeline_mode = #tpu.pipeline_mode<synchronous>, transform_indices = @transform_3, window_bounds = array<i64: 32, 16>}, {pipeline_mode = #tpu.pipeline_mode<synchronous>, transform_indices = @transform_4, window_bounds = array<i64: 32, 16>}, {pipeline_mode = #tpu.pipeline_mode<synchronous>, transform_indices = @transform_5, window_bounds = array<i64: 32, 16>}, {pipeline_mode = #tpu.pipeline_mode<synchronous>, transform_indices = @transform_6, window_bounds = array<i64: 16, 14>}, {pipeline_mode = #tpu.pipeline_mode<synchronous>, transform_indices = @transform_7, window_bounds = array<i64: 32, 16>}, {pipeline_mode = #tpu.pipeline_mode<synchronous>, transform_indices = @transform_8, window_bounds = array<i64: 32, 32>}, {pipeline_mode = #tpu.pipeline_mode<synchronous>, transform_indices = @transform_9, window_bounds = array<i64: 32, 64>}, {pipeline_mode = #tpu.pipeline_mode<synchronous>, transform_indices = @transform_10, window_bounds = array<i64: 64, 32>}, {pipeline_mode = #tpu.pipeline_mode<synchronous>, transform_indices = @transform_11, window_bounds = array<i64: 7, 32>}, {pipeline_mode = #tpu.pipeline_mode<synchronous>, transform_indices = @transform_12, window_bounds = array<i64: 14, 14>}, {pipeline_mode = #tpu.pipeline_mode<synchronous>, transform_indices = @transform_13, window_bounds = array<i64: 14, 112>}, {pipeline_mode = #tpu.pipeline_mode<synchronous>, transform_indices = @transform_14, window_bounds = array<i64: 5, 16>}, {pipeline_mode = #tpu.pipeline_mode<synchronous>, transform_indices = @transform_15, window_bounds = array<i64: 6, 32>}, {pipeline_mode = #tpu.pipeline_mode<synchronous>, transform_indices = @transform_16, window_bounds = array<i64: 1, 14>}, {pipeline_mode = #tpu.pipeline_mode<synchronous>, transform_indices = @transform_17, window_bounds = array<i64: 1, 64>}, {transform_indices = @transform_18, window_bounds = array<i64: 1, 8, 32>}]} {
    %c0 = arith.constant 0 : index
    %c0_0 = arith.constant 0 : index
    %c0_1 = arith.constant 0 : index
    %0 = vector.load %arg1[%c0, %c0_0, %c0_1] : memref<1x8x32xbf16, #tpu.memory_space<vmem>>, vector<1x8x32xbf16>
    %1 = vector.shape_cast %0 : vector<1x8x32xbf16> to vector<8x32xbf16>
    %2 = arith.extf %1 : vector<8x32xbf16> to vector<8x32xf32>
    %c0_2 = arith.constant 0 : index
    %c0_3 = arith.constant 0 : index
    %c0_4 = arith.constant 0 : index
    %3 = vector.load %arg2[%c0_2, %c0_3, %c0_4] : memref<1x1x8xf32, #tpu.memory_space<vmem>>, vector<1x1x8xf32>
    %4 = vector.shape_cast %3 : vector<1x1x8xf32> to vector<1x8xf32>
    %c0_5 = arith.constant 0 : index
    %c0_6 = arith.constant 0 : index
    %5 = vector.load %arg15[%c0_5, %c0_6] : memref<5x16xf32, #tpu.memory_space<vmem>>, vector<5x16xf32>
    %c0_7 = arith.constant 0 : index
    %c0_8 = arith.constant 0 : index
    %6 = vector.load %arg16[%c0_7, %c0_8] : memref<6x32xf32, #tpu.memory_space<vmem>>, vector<6x32xf32>
    %c0_9 = arith.constant 0 : index
    %c0_10 = arith.constant 0 : index
    %7 = vector.load %arg3[%c0_9, %c0_10] : memref<32x16xbf16, #tpu.memory_space<vmem>>, vector<32x16xbf16>
    %cst = arith.constant dense<0.000000e+00> : vector<8x16xf32>
    %8 = tpu.matmul %1, %7, %cst {dimension_numbers = #tpu.dot_dimension_numbers<[1], [0], [0], [1], [0, 0, 1, 1], [], []>} : vector<8x32xbf16>, vector<32x16xbf16>, vector<8x16xf32> -> vector<8x16xf32>
    %9 = vector.extract_strided_slice %5 {offsets = [0, 0], sizes = [1, 16], strides = [1, 1]} : vector<5x16xf32> to vector<1x16xf32>
    %10 = vector.broadcast %9 : vector<1x16xf32> to vector<8x16xf32>
    %11 = arith.addf %8, %10 : vector<8x16xf32>
    %c0_11 = arith.constant 0 : index
    %c0_12 = arith.constant 0 : index
    %12 = vector.load %arg4[%c0_11, %c0_12] : memref<32x16xbf16, #tpu.memory_space<vmem>>, vector<32x16xbf16>
    %cst_13 = arith.constant dense<0.000000e+00> : vector<8x16xf32>
    %13 = tpu.matmul %1, %12, %cst_13 {dimension_numbers = #tpu.dot_dimension_numbers<[1], [0], [0], [1], [0, 0, 1, 1], [], []>} : vector<8x32xbf16>, vector<32x16xbf16>, vector<8x16xf32> -> vector<8x16xf32>
    %14 = vector.extract_strided_slice %5 {offsets = [1, 0], sizes = [1, 16], strides = [1, 1]} : vector<5x16xf32> to vector<1x16xf32>
    %15 = vector.broadcast %14 : vector<1x16xf32> to vector<8x16xf32>
    %16 = arith.addf %13, %15 : vector<8x16xf32>
    %c0_14 = arith.constant 0 : index
    %c0_15 = arith.constant 0 : index
    %17 = vector.load %arg5[%c0_14, %c0_15] : memref<32x16xbf16, #tpu.memory_space<vmem>>, vector<32x16xbf16>
    %cst_16 = arith.constant dense<0.000000e+00> : vector<8x16xf32>
    %18 = tpu.matmul %1, %17, %cst_16 {dimension_numbers = #tpu.dot_dimension_numbers<[1], [0], [0], [1], [0, 0, 1, 1], [], []>} : vector<8x32xbf16>, vector<32x16xbf16>, vector<8x16xf32> -> vector<8x16xf32>
    %19 = vector.extract_strided_slice %5 {offsets = [2, 0], sizes = [1, 16], strides = [1, 1]} : vector<5x16xf32> to vector<1x16xf32>
    %20 = vector.broadcast %19 : vector<1x16xf32> to vector<8x16xf32>
    %21 = arith.addf %18, %20 : vector<8x16xf32>
    %22 = vector.extract_strided_slice %11 {offsets = [0, 0], sizes = [8, 8], strides = [1, 1]} : vector<8x16xf32> to vector<8x8xf32>
    %23 = arith.truncf %22 : vector<8x8xf32> to vector<8x8xbf16>
    %c0_17 = arith.constant 0 : index
    %c0_18 = arith.constant 0 : index
    %c0_19 = arith.constant 0 : index
    %24 = vector.load %arg21[%c0_17, %c0_18, %c0_19] : memref<2x8x8xbf16, #tpu.memory_space<vmem>>, vector<1x8x8xbf16>
    %25 = vector.shape_cast %24 : vector<1x8x8xbf16> to vector<8x8xbf16>
    %26 = vector.shape_cast %23 : vector<8x8xbf16> to vector<1x8x8xbf16>
    tpu.vector_store %arg21[%c0_17, %c0_18, %c0_19], %26 {strides = array<i32>} : memref<2x8x8xbf16, #tpu.memory_space<vmem>>, vector<1x8x8xbf16>,
    %27 = vector.extract_strided_slice %16 {offsets = [0, 0], sizes = [8, 8], strides = [1, 1]} : vector<8x16xf32> to vector<8x8xf32>
    %28 = arith.truncf %27 : vector<8x8xf32> to vector<8x8xbf16>
    %c0_20 = arith.constant 0 : index
    %c0_21 = arith.constant 0 : index
    %c0_22 = arith.constant 0 : index
    %29 = vector.load %arg22[%c0_20, %c0_21, %c0_22] : memref<2x8x8xbf16, #tpu.memory_space<vmem>>, vector<1x8x8xbf16>
    %30 = vector.shape_cast %29 : vector<1x8x8xbf16> to vector<8x8xbf16>
    %31 = vector.shape_cast %28 : vector<8x8xbf16> to vector<1x8x8xbf16>
    tpu.vector_store %arg22[%c0_20, %c0_21, %c0_22], %31 {strides = array<i32>} : memref<2x8x8xbf16, #tpu.memory_space<vmem>>, vector<1x8x8xbf16>,
    %32 = vector.extract_strided_slice %21 {offsets = [0, 0], sizes = [8, 8], strides = [1, 1]} : vector<8x16xf32> to vector<8x8xf32>
    %33 = arith.truncf %32 : vector<8x8xf32> to vector<8x8xbf16>
    %c0_23 = arith.constant 0 : index
    %c0_24 = arith.constant 0 : index
    %c0_25 = arith.constant 0 : index
    %34 = vector.load %arg23[%c0_23, %c0_24, %c0_25] : memref<2x8x8xbf16, #tpu.memory_space<vmem>>, vector<1x8x8xbf16>
    %35 = vector.shape_cast %34 : vector<1x8x8xbf16> to vector<8x8xbf16>
    %36 = vector.shape_cast %33 : vector<8x8xbf16> to vector<1x8x8xbf16>
    tpu.vector_store %arg23[%c0_23, %c0_24, %c0_25], %36 {strides = array<i32>} : memref<2x8x8xbf16, #tpu.memory_space<vmem>>, vector<1x8x8xbf16>,
    %37 = vector.extract_strided_slice %11 {offsets = [0, 8], sizes = [8, 8], strides = [1, 1]} : vector<8x16xf32> to vector<8x8xf32>
    %38 = arith.truncf %37 : vector<8x8xf32> to vector<8x8xbf16>
    %c1 = arith.constant 1 : index
    %c0_26 = arith.constant 0 : index
    %c0_27 = arith.constant 0 : index
    %39 = vector.load %arg21[%c1, %c0_26, %c0_27] : memref<2x8x8xbf16, #tpu.memory_space<vmem>>, vector<1x8x8xbf16>
    %40 = vector.shape_cast %39 : vector<1x8x8xbf16> to vector<8x8xbf16>
    %41 = vector.shape_cast %38 : vector<8x8xbf16> to vector<1x8x8xbf16>
    tpu.vector_store %arg21[%c1, %c0_26, %c0_27], %41 {strides = array<i32>} : memref<2x8x8xbf16, #tpu.memory_space<vmem>>, vector<1x8x8xbf16>,
    %42 = vector.extract_strided_slice %16 {offsets = [0, 8], sizes = [8, 8], strides = [1, 1]} : vector<8x16xf32> to vector<8x8xf32>
    %43 = arith.truncf %42 : vector<8x8xf32> to vector<8x8xbf16>
    %c1_28 = arith.constant 1 : index
    %c0_29 = arith.constant 0 : index
    %c0_30 = arith.constant 0 : index
    %44 = vector.load %arg22[%c1_28, %c0_29, %c0_30] : memref<2x8x8xbf16, #tpu.memory_space<vmem>>, vector<1x8x8xbf16>
    %45 = vector.shape_cast %44 : vector<1x8x8xbf16> to vector<8x8xbf16>
    %46 = vector.shape_cast %43 : vector<8x8xbf16> to vector<1x8x8xbf16>
    tpu.vector_store %arg22[%c1_28, %c0_29, %c0_30], %46 {strides = array<i32>} : memref<2x8x8xbf16, #tpu.memory_space<vmem>>, vector<1x8x8xbf16>,
    %47 = vector.extract_strided_slice %21 {offsets = [0, 8], sizes = [8, 8], strides = [1, 1]} : vector<8x16xf32> to vector<8x8xf32>
    %48 = arith.truncf %47 : vector<8x8xf32> to vector<8x8xbf16>
    %c1_31 = arith.constant 1 : index
    %c0_32 = arith.constant 0 : index
    %c0_33 = arith.constant 0 : index
    %49 = vector.load %arg23[%c1_31, %c0_32, %c0_33] : memref<2x8x8xbf16, #tpu.memory_space<vmem>>, vector<1x8x8xbf16>
    %50 = vector.shape_cast %49 : vector<1x8x8xbf16> to vector<8x8xbf16>
    %51 = vector.shape_cast %48 : vector<8x8xbf16> to vector<1x8x8xbf16>
    tpu.vector_store %arg23[%c1_31, %c0_32, %c0_33], %51 {strides = array<i32>} : memref<2x8x8xbf16, #tpu.memory_space<vmem>>, vector<1x8x8xbf16>,
    %52 = tpu.iota {dimensions = array<i32: 0>} : vector<8x1xi32>
    %c3_i32 = arith.constant 3 : i32
    %53 = vector.broadcast %c3_i32 : i32 to vector<8x1xi32>
    %54 = arith.cmpi sge, %52, %53 : vector<8x1xi32>
    %c2_i32 = arith.constant 2 : i32
    %55 = vector.broadcast %c2_i32 : i32 to vector<8x1xi32>
    %56 = arith.cmpi sge, %52, %55 : vector<8x1xi32>
    %c1_i32 = arith.constant 1 : i32
    %57 = vector.broadcast %c1_i32 : i32 to vector<8x1xi32>
    %58 = arith.cmpi sge, %52, %57 : vector<8x1xi32>
    %c7_i32 = arith.constant 7 : i32
    %59 = vector.broadcast %c7_i32 : i32 to vector<8x1xi32>
    %60 = arith.cmpi slt, %52, %59 : vector<8x1xi32>
    %c6_i32 = arith.constant 6 : i32
    %61 = vector.broadcast %c6_i32 : i32 to vector<8x1xi32>
    %62 = arith.cmpi slt, %52, %61 : vector<8x1xi32>
    %c5_i32 = arith.constant 5 : i32
    %63 = vector.broadcast %c5_i32 : i32 to vector<8x1xi32>
    %64 = arith.cmpi slt, %52, %63 : vector<8x1xi32>
    %c0_34 = arith.constant 0 : index
    %c0_35 = arith.constant 0 : index
    %65 = vector.load %arg12[%c0_34, %c0_35] : memref<7x32xf32, #tpu.memory_space<vmem>>, vector<7x32xf32>
    %66 = vector.extract_strided_slice %65 {offsets = [3, 0], sizes = [1, 32], strides = [1, 1]} : vector<7x32xf32> to vector<1x32xf32>
    %67 = vector.broadcast %66 : vector<1x32xf32> to vector<8x32xf32>
    %68 = arith.mulf %2, %67 : vector<8x32xf32>
    %c3_i32_36 = arith.constant 3 : i32
    %69 = tpu.dynamic_rotate %2 by %c3_i32_36 dim 0 : vector<8x32xf32>, i32 -> vector<8x32xf32>
    %cst_37 = arith.constant 0.000000e+00 : f32
    %70 = vector.shape_cast %54 : vector<8x1xi1> to vector<8x1xi1>
    %71 = vector.broadcast %70 : vector<8x1xi1> to vector<8x32xi1>
    %72 = vector.broadcast %cst_37 : f32 to vector<8x32xf32>
    %73 = arith.select %71, %69, %72 : vector<8x32xi1>, vector<8x32xf32>
    %74 = vector.extract_strided_slice %65 {offsets = [0, 0], sizes = [1, 32], strides = [1, 1]} : vector<7x32xf32> to vector<1x32xf32>
    %75 = vector.broadcast %74 : vector<1x32xf32> to vector<8x32xf32>
    %76 = arith.mulf %73, %75 : vector<8x32xf32>
    %77 = arith.addf %68, %76 : vector<8x32xf32>
    %c2_i32_38 = arith.constant 2 : i32
    %78 = tpu.dynamic_rotate %2 by %c2_i32_38 dim 0 : vector<8x32xf32>, i32 -> vector<8x32xf32>
    %cst_39 = arith.constant 0.000000e+00 : f32
    %79 = vector.shape_cast %56 : vector<8x1xi1> to vector<8x1xi1>
    %80 = vector.broadcast %79 : vector<8x1xi1> to vector<8x32xi1>
    %81 = vector.broadcast %cst_39 : f32 to vector<8x32xf32>
    %82 = arith.select %80, %78, %81 : vector<8x32xi1>, vector<8x32xf32>
    %83 = vector.extract_strided_slice %65 {offsets = [1, 0], sizes = [1, 32], strides = [1, 1]} : vector<7x32xf32> to vector<1x32xf32>
    %84 = vector.broadcast %83 : vector<1x32xf32> to vector<8x32xf32>
    %85 = arith.mulf %82, %84 : vector<8x32xf32>
    %86 = arith.addf %77, %85 : vector<8x32xf32>
    %c1_i32_40 = arith.constant 1 : i32
    %87 = tpu.dynamic_rotate %2 by %c1_i32_40 dim 0 : vector<8x32xf32>, i32 -> vector<8x32xf32>
    %cst_41 = arith.constant 0.000000e+00 : f32
    %88 = vector.shape_cast %58 : vector<8x1xi1> to vector<8x1xi1>
    %89 = vector.broadcast %88 : vector<8x1xi1> to vector<8x32xi1>
    %90 = vector.broadcast %cst_41 : f32 to vector<8x32xf32>
    %91 = arith.select %89, %87, %90 : vector<8x32xi1>, vector<8x32xf32>
    %92 = vector.extract_strided_slice %65 {offsets = [2, 0], sizes = [1, 32], strides = [1, 1]} : vector<7x32xf32> to vector<1x32xf32>
    %93 = vector.broadcast %92 : vector<1x32xf32> to vector<8x32xf32>
    %94 = arith.mulf %91, %93 : vector<8x32xf32>
    %95 = arith.addf %86, %94 : vector<8x32xf32>
    %c7_i32_42 = arith.constant 7 : i32
    %96 = tpu.dynamic_rotate %2 by %c7_i32_42 dim 0 : vector<8x32xf32>, i32 -> vector<8x32xf32>
    %cst_43 = arith.constant 0.000000e+00 : f32
    %97 = vector.shape_cast %60 : vector<8x1xi1> to vector<8x1xi1>
    %98 = vector.broadcast %97 : vector<8x1xi1> to vector<8x32xi1>
    %99 = vector.broadcast %cst_43 : f32 to vector<8x32xf32>
    %100 = arith.select %98, %96, %99 : vector<8x32xi1>, vector<8x32xf32>
    %101 = vector.extract_strided_slice %65 {offsets = [4, 0], sizes = [1, 32], strides = [1, 1]} : vector<7x32xf32> to vector<1x32xf32>
    %102 = vector.broadcast %101 : vector<1x32xf32> to vector<8x32xf32>
    %103 = arith.mulf %100, %102 : vector<8x32xf32>
    %104 = arith.addf %95, %103 : vector<8x32xf32>
    %c6_i32_44 = arith.constant 6 : i32
    %105 = tpu.dynamic_rotate %2 by %c6_i32_44 dim 0 : vector<8x32xf32>, i32 -> vector<8x32xf32>
    %cst_45 = arith.constant 0.000000e+00 : f32
    %106 = vector.shape_cast %62 : vector<8x1xi1> to vector<8x1xi1>
    %107 = vector.broadcast %106 : vector<8x1xi1> to vector<8x32xi1>
    %108 = vector.broadcast %cst_45 : f32 to vector<8x32xf32>
    %109 = arith.select %107, %105, %108 : vector<8x32xi1>, vector<8x32xf32>
    %110 = vector.extract_strided_slice %65 {offsets = [5, 0], sizes = [1, 32], strides = [1, 1]} : vector<7x32xf32> to vector<1x32xf32>
    %111 = vector.broadcast %110 : vector<1x32xf32> to vector<8x32xf32>
    %112 = arith.mulf %109, %111 : vector<8x32xf32>
    %113 = arith.addf %104, %112 : vector<8x32xf32>
    %c5_i32_46 = arith.constant 5 : i32
    %114 = tpu.dynamic_rotate %2 by %c5_i32_46 dim 0 : vector<8x32xf32>, i32 -> vector<8x32xf32>
    %cst_47 = arith.constant 0.000000e+00 : f32
    %115 = vector.shape_cast %64 : vector<8x1xi1> to vector<8x1xi1>
    %116 = vector.broadcast %115 : vector<8x1xi1> to vector<8x32xi1>
    %117 = vector.broadcast %cst_47 : f32 to vector<8x32xf32>
    %118 = arith.select %116, %114, %117 : vector<8x32xi1>, vector<8x32xf32>
    %119 = vector.extract_strided_slice %65 {offsets = [6, 0], sizes = [1, 32], strides = [1, 1]} : vector<7x32xf32> to vector<1x32xf32>
    %120 = vector.broadcast %119 : vector<1x32xf32> to vector<8x32xf32>
    %121 = arith.mulf %118, %120 : vector<8x32xf32>
    %122 = arith.addf %113, %121 : vector<8x32xf32>
    %123 = arith.truncf %122 : vector<8x32xf32> to vector<8x32xbf16>
    %c0_48 = arith.constant 0 : index
    %c0_49 = arith.constant 0 : index
    %124 = vector.load %arg6[%c0_48, %c0_49] : memref<32x16xbf16, #tpu.memory_space<vmem>>, vector<32x16xbf16>
    %cst_50 = arith.constant dense<0.000000e+00> : vector<8x16xf32>
    %125 = tpu.matmul %123, %124, %cst_50 {dimension_numbers = #tpu.dot_dimension_numbers<[1], [0], [0], [1], [0, 0, 1, 1], [], []>} : vector<8x32xbf16>, vector<32x16xbf16>, vector<8x16xf32> -> vector<8x16xf32>
    %126 = vector.extract_strided_slice %5 {offsets = [3, 0], sizes = [1, 16], strides = [1, 1]} : vector<5x16xf32> to vector<1x16xf32>
    %127 = vector.broadcast %126 : vector<1x16xf32> to vector<8x16xf32>
    %128 = arith.addf %125, %127 : vector<8x16xf32>
    %129 = arith.mulf %128, %11 : vector<8x16xf32>
    %130 = arith.truncf %129 : vector<8x16xf32> to vector<8x16xbf16>
    %c0_51 = arith.constant 0 : index
    %c0_52 = arith.constant 0 : index
    %131 = vector.load %arg7[%c0_51, %c0_52] : memref<16x14xbf16, #tpu.memory_space<vmem>>, vector<16x14xbf16>
    %cst_53 = arith.constant dense<0.000000e+00> : vector<8x14xf32>
    %132 = tpu.matmul %130, %131, %cst_53 {dimension_numbers = #tpu.dot_dimension_numbers<[1], [0], [0], [1], [0, 0, 1, 1], [], []>} : vector<8x16xbf16>, vector<16x14xbf16>, vector<8x14xf32> -> vector<8x14xf32>
    %c0_54 = arith.constant 0 : index
    %c0_55 = arith.constant 0 : index
    %133 = vector.load %arg17[%c0_54, %c0_55] : memref<1x14xf32, #tpu.memory_space<vmem>>, vector<1x14xf32>
    %134 = vector.broadcast %133 : vector<1x14xf32> to vector<8x14xf32>
    %135 = arith.addf %132, %134 : vector<8x14xf32>
    %cst_56 = arith.constant dense<0xFF800000> : vector<8xf32>
    %136 = vector.multi_reduction <maximumf>, %135, %cst_56 [1] : vector<8x14xf32> to vector<8xf32>
    %137 = vector.shape_cast %136 : vector<8xf32> to vector<8x1xf32>
    %138 = vector.broadcast %137 : vector<8x1xf32> to vector<8x14xf32>
    %139 = arith.subf %135, %138 : vector<8x14xf32>
    %140 = math.exp %139 : vector<8x14xf32>
    %141 = arith.truncf %140 : vector<8x14xf32> to vector<8x14xbf16>
    %c0_57 = arith.constant 0 : index
    %c0_58 = arith.constant 0 : index
    %142 = vector.load %arg13[%c0_57, %c0_58] : memref<14x14xbf16, #tpu.memory_space<vmem>>, vector<14x14xbf16>
    %cst_59 = arith.constant dense<0.000000e+00> : vector<8x14xf32>
    %143 = tpu.matmul %141, %142, %cst_59 {dimension_numbers = #tpu.dot_dimension_numbers<[1], [0], [0], [1], [0, 0, 1, 1], [], []>} : vector<8x14xbf16>, vector<14x14xbf16>, vector<8x14xf32> -> vector<8x14xf32>
    %cst_60 = arith.constant 1.000000e-30 : f32
    %144 = vector.broadcast %cst_60 : f32 to vector<8x14xf32>
    %145 = arith.maximumf %143, %144 : vector<8x14xf32>
    %146 = tpu.reciprocal %145 {approx = true} : vector<8x14xf32> -> vector<8x14xf32>
    %147 = arith.mulf %140, %146 : vector<8x14xf32>
    %148 = arith.truncf %147 : vector<8x14xf32> to vector<8x14xbf16>
    %c0_61 = arith.constant 0 : index
    %c0_62 = arith.constant 0 : index
    %149 = vector.load %arg8[%c0_61, %c0_62] : memref<32x16xbf16, #tpu.memory_space<vmem>>, vector<32x16xbf16>
    %cst_63 = arith.constant dense<0.000000e+00> : vector<8x16xf32>
    %150 = tpu.matmul %1, %149, %cst_63 {dimension_numbers = #tpu.dot_dimension_numbers<[1], [0], [0], [1], [0, 0, 1, 1], [], []>} : vector<8x32xbf16>, vector<32x16xbf16>, vector<8x16xf32> -> vector<8x16xf32>
    %151 = vector.extract_strided_slice %5 {offsets = [4, 0], sizes = [1, 16], strides = [1, 1]} : vector<5x16xf32> to vector<1x16xf32>
    %152 = vector.broadcast %151 : vector<1x16xf32> to vector<8x16xf32>
    %153 = arith.addf %150, %152 : vector<8x16xf32>
    %c0_64 = arith.constant 0 : index
    %c0_65 = arith.constant 0 : index
    %154 = vector.load %arg14[%c0_64, %c0_65] : memref<14x112xbf16, #tpu.memory_space<vmem>>, vector<14x112xbf16>
    %155 = vector.extract_strided_slice %154 {offsets = [0, 48], sizes = [14, 16], strides = [1, 1]} : vector<14x112xbf16> to vector<14x16xbf16>
    %cst_66 = arith.constant dense<0.000000e+00> : vector<8x16xf32>
    %156 = tpu.matmul %148, %155, %cst_66 {dimension_numbers = #tpu.dot_dimension_numbers<[1], [0], [0], [1], [0, 0, 1, 1], [], []>} : vector<8x14xbf16>, vector<14x16xbf16>, vector<8x16xf32> -> vector<8x16xf32>
    %157 = arith.mulf %153, %156 : vector<8x16xf32>
    %158 = vector.extract_strided_slice %154 {offsets = [0, 0], sizes = [14, 16], strides = [1, 1]} : vector<14x112xbf16> to vector<14x16xbf16>
    %cst_67 = arith.constant dense<0.000000e+00> : vector<8x16xf32>
    %159 = tpu.matmul %148, %158, %cst_67 {dimension_numbers = #tpu.dot_dimension_numbers<[1], [0], [0], [1], [0, 0, 1, 1], [], []>} : vector<8x14xbf16>, vector<14x16xbf16>, vector<8x16xf32> -> vector<8x16xf32>
    %c3_i32_68 = arith.constant 3 : i32
    %160 = tpu.dynamic_rotate %153 by %c3_i32_68 dim 0 : vector<8x16xf32>, i32 -> vector<8x16xf32>
    %cst_69 = arith.constant 0.000000e+00 : f32
    %161 = vector.shape_cast %54 : vector<8x1xi1> to vector<8x1xi1>
    %162 = vector.broadcast %161 : vector<8x1xi1> to vector<8x16xi1>
    %163 = vector.broadcast %cst_69 : f32 to vector<8x16xf32>
    %164 = arith.select %162, %160, %163 : vector<8x16xi1>, vector<8x16xf32>
    %165 = arith.mulf %164, %159 : vector<8x16xf32>
    %166 = arith.addf %157, %165 : vector<8x16xf32>
    %167 = vector.extract_strided_slice %154 {offsets = [0, 16], sizes = [14, 16], strides = [1, 1]} : vector<14x112xbf16> to vector<14x16xbf16>
    %cst_70 = arith.constant dense<0.000000e+00> : vector<8x16xf32>
    %168 = tpu.matmul %148, %167, %cst_70 {dimension_numbers = #tpu.dot_dimension_numbers<[1], [0], [0], [1], [0, 0, 1, 1], [], []>} : vector<8x14xbf16>, vector<14x16xbf16>, vector<8x16xf32> -> vector<8x16xf32>
    %c2_i32_71 = arith.constant 2 : i32
    %169 = tpu.dynamic_rotate %153 by %c2_i32_71 dim 0 : vector<8x16xf32>, i32 -> vector<8x16xf32>
    %cst_72 = arith.constant 0.000000e+00 : f32
    %170 = vector.shape_cast %56 : vector<8x1xi1> to vector<8x1xi1>
    %171 = vector.broadcast %170 : vector<8x1xi1> to vector<8x16xi1>
    %172 = vector.broadcast %cst_72 : f32 to vector<8x16xf32>
    %173 = arith.select %171, %169, %172 : vector<8x16xi1>, vector<8x16xf32>
    %174 = arith.mulf %173, %168 : vector<8x16xf32>
    %175 = arith.addf %166, %174 : vector<8x16xf32>
    %176 = vector.extract_strided_slice %154 {offsets = [0, 32], sizes = [14, 16], strides = [1, 1]} : vector<14x112xbf16> to vector<14x16xbf16>
    %cst_73 = arith.constant dense<0.000000e+00> : vector<8x16xf32>
    %177 = tpu.matmul %148, %176, %cst_73 {dimension_numbers = #tpu.dot_dimension_numbers<[1], [0], [0], [1], [0, 0, 1, 1], [], []>} : vector<8x14xbf16>, vector<14x16xbf16>, vector<8x16xf32> -> vector<8x16xf32>
    %c1_i32_74 = arith.constant 1 : i32
    %178 = tpu.dynamic_rotate %153 by %c1_i32_74 dim 0 : vector<8x16xf32>, i32 -> vector<8x16xf32>
    %cst_75 = arith.constant 0.000000e+00 : f32
    %179 = vector.shape_cast %58 : vector<8x1xi1> to vector<8x1xi1>
    %180 = vector.broadcast %179 : vector<8x1xi1> to vector<8x16xi1>
    %181 = vector.broadcast %cst_75 : f32 to vector<8x16xf32>
    %182 = arith.select %180, %178, %181 : vector<8x16xi1>, vector<8x16xf32>
    %183 = arith.mulf %182, %177 : vector<8x16xf32>
    %184 = arith.addf %175, %183 : vector<8x16xf32>
    %185 = vector.extract_strided_slice %154 {offsets = [0, 64], sizes = [14, 16], strides = [1, 1]} : vector<14x112xbf16> to vector<14x16xbf16>
    %cst_76 = arith.constant dense<0.000000e+00> : vector<8x16xf32>
    %186 = tpu.matmul %148, %185, %cst_76 {dimension_numbers = #tpu.dot_dimension_numbers<[1], [0], [0], [1], [0, 0, 1, 1], [], []>} : vector<8x14xbf16>, vector<14x16xbf16>, vector<8x16xf32> -> vector<8x16xf32>
    %c7_i32_77 = arith.constant 7 : i32
    %187 = tpu.dynamic_rotate %153 by %c7_i32_77 dim 0 : vector<8x16xf32>, i32 -> vector<8x16xf32>
    %cst_78 = arith.constant 0.000000e+00 : f32
    %188 = vector.shape_cast %60 : vector<8x1xi1> to vector<8x1xi1>
    %189 = vector.broadcast %188 : vector<8x1xi1> to vector<8x16xi1>
    %190 = vector.broadcast %cst_78 : f32 to vector<8x16xf32>
    %191 = arith.select %189, %187, %190 : vector<8x16xi1>, vector<8x16xf32>
    %192 = arith.mulf %191, %186 : vector<8x16xf32>
    %193 = arith.addf %184, %192 : vector<8x16xf32>
    %194 = vector.extract_strided_slice %154 {offsets = [0, 80], sizes = [14, 16], strides = [1, 1]} : vector<14x112xbf16> to vector<14x16xbf16>
    %cst_79 = arith.constant dense<0.000000e+00> : vector<8x16xf32>
    %195 = tpu.matmul %148, %194, %cst_79 {dimension_numbers = #tpu.dot_dimension_numbers<[1], [0], [0], [1], [0, 0, 1, 1], [], []>} : vector<8x14xbf16>, vector<14x16xbf16>, vector<8x16xf32> -> vector<8x16xf32>
    %c6_i32_80 = arith.constant 6 : i32
    %196 = tpu.dynamic_rotate %153 by %c6_i32_80 dim 0 : vector<8x16xf32>, i32 -> vector<8x16xf32>
    %cst_81 = arith.constant 0.000000e+00 : f32
    %197 = vector.shape_cast %62 : vector<8x1xi1> to vector<8x1xi1>
    %198 = vector.broadcast %197 : vector<8x1xi1> to vector<8x16xi1>
    %199 = vector.broadcast %cst_81 : f32 to vector<8x16xf32>
    %200 = arith.select %198, %196, %199 : vector<8x16xi1>, vector<8x16xf32>
    %201 = arith.mulf %200, %195 : vector<8x16xf32>
    %202 = arith.addf %193, %201 : vector<8x16xf32>
    %203 = vector.extract_strided_slice %154 {offsets = [0, 96], sizes = [14, 16], strides = [1, 1]} : vector<14x112xbf16> to vector<14x16xbf16>
    %cst_82 = arith.constant dense<0.000000e+00> : vector<8x16xf32>
    %204 = tpu.matmul %148, %203, %cst_82 {dimension_numbers = #tpu.dot_dimension_numbers<[1], [0], [0], [1], [0, 0, 1, 1], [], []>} : vector<8x14xbf16>, vector<14x16xbf16>, vector<8x16xf32> -> vector<8x16xf32>
    %c5_i32_83 = arith.constant 5 : i32
    %205 = tpu.dynamic_rotate %153 by %c5_i32_83 dim 0 : vector<8x16xf32>, i32 -> vector<8x16xf32>
    %cst_84 = arith.constant 0.000000e+00 : f32
    %206 = vector.shape_cast %64 : vector<8x1xi1> to vector<8x1xi1>
    %207 = vector.broadcast %206 : vector<8x1xi1> to vector<8x16xi1>
    %208 = vector.broadcast %cst_84 : f32 to vector<8x16xf32>
    %209 = arith.select %207, %205, %208 : vector<8x16xi1>, vector<8x16xf32>
    %210 = arith.mulf %209, %204 : vector<8x16xf32>
    %211 = arith.addf %202, %210 : vector<8x16xf32>
    %212 = arith.truncf %211 : vector<8x16xf32> to vector<8x16xbf16>
    %c0_85 = arith.constant 0 : index
    %c16 = arith.constant 16 : index
    %213 = vector.load %arg20[%c0_85, %c16] : memref<8x32xbf16, #tpu.memory_space<vmem>>, vector<8x16xbf16>
    tpu.vector_store %arg20[%c0_85, %c16], %212 {strides = array<i32>} : memref<8x32xbf16, #tpu.memory_space<vmem>>, vector<8x16xbf16>,
    %c0_86 = arith.constant 0 : index
    %c0_87 = arith.constant 0 : index
    %c0_88 = arith.constant 0 : index
    %214 = vector.load %arg21[%c0_86, %c0_87, %c0_88] : memref<2x8x8xbf16, #tpu.memory_space<vmem>>, vector<2x8x8xbf16>
    %c0_89 = arith.constant 0 : index
    %c0_90 = arith.constant 0 : index
    %c0_91 = arith.constant 0 : index
    %215 = vector.load %arg22[%c0_89, %c0_90, %c0_91] : memref<2x8x8xbf16, #tpu.memory_space<vmem>>, vector<2x8x8xbf16>
    "tpu.trace_start"() <{level = 10 : i32, message = "hqd,hkd->hqk"}> : () -> ()
    %cst_92 = arith.constant dense<0.000000e+00> : vector<2x8x8xf32>
    %216 = tpu.matmul %214, %215, %cst_92 {dimension_numbers = #tpu.dot_dimension_numbers<[2], [2], [1], [1], [0, 0, 0, 1, 1, 1], [0], [0]>} : vector<2x8x8xbf16>, vector<2x8x8xbf16>, vector<2x8x8xf32> -> vector<2x8x8xf32>
    "tpu.trace_stop"() : () -> ()
    %cst_93 = arith.constant 0.353553385 : f32
    %217 = vector.broadcast %cst_93 : f32 to vector<2x8x8xf32>
    %218 = arith.mulf %216, %217 : vector<2x8x8xf32>
    %219 = vector.shape_cast %4 : vector<1x8xf32> to vector<1x1x8xf32>
    %220 = vector.broadcast %219 : vector<1x1x8xf32> to vector<2x8x8xf32>
    %221 = arith.addf %218, %220 : vector<2x8x8xf32>
    %cst_94 = arith.constant dense<0xFF800000> : vector<2x8xf32>
    %222 = vector.multi_reduction <maximumf>, %221, %cst_94 [2] : vector<2x8x8xf32> to vector<2x8xf32>
    %223 = vector.shape_cast %222 : vector<2x8xf32> to vector<2x8x1xf32>
    %224 = vector.broadcast %223 : vector<2x8x1xf32> to vector<2x8x8xf32>
    %225 = arith.subf %221, %224 : vector<2x8x8xf32>
    %226 = math.exp %225 : vector<2x8x8xf32>
    %cst_95 = arith.constant dense<0.000000e+00> : vector<2x8xf32>
    %227 = vector.multi_reduction <add>, %226, %cst_95 [2] : vector<2x8x8xf32> to vector<2x8xf32>
    %228 = vector.shape_cast %227 : vector<2x8xf32> to vector<2x8x1xf32>
    %229 = tpu.reciprocal %228 {approx = true} : vector<2x8x1xf32> -> vector<2x8x1xf32>
    %230 = vector.broadcast %229 : vector<2x8x1xf32> to vector<2x8x8xf32>
    %231 = arith.mulf %226, %230 : vector<2x8x8xf32>
    %232 = arith.truncf %231 : vector<2x8x8xf32> to vector<2x8x8xbf16>
    %c0_96 = arith.constant 0 : index
    %c0_97 = arith.constant 0 : index
    %c0_98 = arith.constant 0 : index
    %233 = vector.load %arg23[%c0_96, %c0_97, %c0_98] : memref<2x8x8xbf16, #tpu.memory_space<vmem>>, vector<2x8x8xbf16>
    "tpu.trace_start"() <{level = 10 : i32, message = "hqk,hkd->hqd"}> : () -> ()
    %cst_99 = arith.constant dense<0.000000e+00> : vector<2x8x8xf32>
    %234 = tpu.matmul %232, %233, %cst_99 {dimension_numbers = #tpu.dot_dimension_numbers<[2], [1], [1], [2], [0, 0, 0, 1, 1, 2], [0], [0]>} : vector<2x8x8xbf16>, vector<2x8x8xbf16>, vector<2x8x8xf32> -> vector<2x8x8xf32>
    "tpu.trace_stop"() : () -> ()
    %235 = vector.extract_strided_slice %234 {offsets = [0, 0, 0], sizes = [1, 8, 8], strides = [1, 1, 1]} : vector<2x8x8xf32> to vector<1x8x8xf32>
    %236 = vector.shape_cast %235 : vector<1x8x8xf32> to vector<8x8xf32>
    %237 = vector.extract_strided_slice %234 {offsets = [1, 0, 0], sizes = [1, 8, 8], strides = [1, 1, 1]} : vector<2x8x8xf32> to vector<1x8x8xf32>
    %238 = vector.shape_cast %237 : vector<1x8x8xf32> to vector<8x8xf32>
    %239 = tpu.concatenate %236, %238 in 1 : vector<8x8xf32>, vector<8x8xf32> -> vector<8x16xf32>
    %240 = arith.truncf %239 : vector<8x16xf32> to vector<8x16xbf16>
    %c0_100 = arith.constant 0 : index
    %c0_101 = arith.constant 0 : index
    %241 = vector.load %arg20[%c0_100, %c0_101] : memref<8x32xbf16, #tpu.memory_space<vmem>>, vector<8x16xbf16>
    tpu.vector_store %arg20[%c0_100, %c0_101], %240 {strides = array<i32>} : memref<8x32xbf16, #tpu.memory_space<vmem>>, vector<8x16xbf16>,
    %c0_102 = arith.constant 0 : index
    %c0_103 = arith.constant 0 : index
    %242 = vector.load %arg20[%c0_102, %c0_103] : memref<8x32xbf16, #tpu.memory_space<vmem>>, vector<8x32xbf16>
    %c0_104 = arith.constant 0 : index
    %c0_105 = arith.constant 0 : index
    %243 = vector.load %arg9[%c0_104, %c0_105] : memref<32x32xbf16, #tpu.memory_space<vmem>>, vector<32x32xbf16>
    %cst_106 = arith.constant dense<0.000000e+00> : vector<8x32xf32>
    %244 = tpu.matmul %242, %243, %cst_106 {dimension_numbers = #tpu.dot_dimension_numbers<[1], [0], [0], [1], [0, 0, 1, 1], [], []>} : vector<8x32xbf16>, vector<32x32xbf16>, vector<8x32xf32> -> vector<8x32xf32>
    %245 = vector.extract_strided_slice %6 {offsets = [0, 0], sizes = [1, 32], strides = [1, 1]} : vector<6x32xf32> to vector<1x32xf32>
    %246 = vector.broadcast %245 : vector<1x32xf32> to vector<8x32xf32>
    %247 = arith.addf %244, %246 : vector<8x32xf32>
    %248 = arith.addf %247, %2 : vector<8x32xf32>
    %249 = vector.extract_strided_slice %6 {offsets = [1, 0], sizes = [1, 32], strides = [1, 1]} : vector<6x32xf32> to vector<1x32xf32>
    %250 = vector.extract_strided_slice %6 {offsets = [2, 0], sizes = [1, 32], strides = [1, 1]} : vector<6x32xf32> to vector<1x32xf32>
    %cst_107 = arith.constant dense<0.000000e+00> : vector<8xf32>
    %251 = vector.multi_reduction <add>, %248, %cst_107 [1] : vector<8x32xf32> to vector<8xf32>
    %252 = vector.shape_cast %251 : vector<8xf32> to vector<8x1xf32>
    %cst_108 = arith.constant 3.200000e+01 : f32
    %253 = vector.broadcast %cst_108 : f32 to vector<8x1xf32>
    %254 = arith.divf %252, %253 : vector<8x1xf32>
    %255 = vector.broadcast %254 : vector<8x1xf32> to vector<8x32xf32>
    %256 = arith.subf %248, %255 : vector<8x32xf32>
    %257 = arith.mulf %256, %256 : vector<8x32xf32>
    %cst_109 = arith.constant dense<0.000000e+00> : vector<8xf32>
    %258 = vector.multi_reduction <add>, %257, %cst_109 [1] : vector<8x32xf32> to vector<8xf32>
    %259 = vector.shape_cast %258 : vector<8xf32> to vector<8x1xf32>
    %cst_110 = arith.constant 3.200000e+01 : f32
    %260 = vector.broadcast %cst_110 : f32 to vector<8x1xf32>
    %261 = arith.divf %259, %260 : vector<8x1xf32>
    %262 = vector.broadcast %254 : vector<8x1xf32> to vector<8x32xf32>
    %263 = arith.subf %248, %262 : vector<8x32xf32>
    %cst_111 = arith.constant 9.99999996E-13 : f32
    %264 = vector.broadcast %cst_111 : f32 to vector<8x1xf32>
    %265 = arith.addf %261, %264 : vector<8x1xf32>
    %266 = math.rsqrt %265 : vector<8x1xf32>
    %267 = vector.broadcast %266 : vector<8x1xf32> to vector<8x32xf32>
    %268 = arith.mulf %263, %267 : vector<8x32xf32>
    %269 = vector.broadcast %249 : vector<1x32xf32> to vector<8x32xf32>
    %270 = arith.mulf %268, %269 : vector<8x32xf32>
    %271 = vector.broadcast %250 : vector<1x32xf32> to vector<8x32xf32>
    %272 = arith.addf %270, %271 : vector<8x32xf32>
    %273 = arith.truncf %272 : vector<8x32xf32> to vector<8x32xbf16>
    %c0_112 = arith.constant 0 : index
    %c0_113 = arith.constant 0 : index
    %274 = vector.load %arg10[%c0_112, %c0_113] : memref<32x64xbf16, #tpu.memory_space<vmem>>, vector<32x64xbf16>
    %cst_114 = arith.constant dense<0.000000e+00> : vector<8x64xf32>
    %275 = tpu.matmul %273, %274, %cst_114 {dimension_numbers = #tpu.dot_dimension_numbers<[1], [0], [0], [1], [0, 0, 1, 1], [], []>} : vector<8x32xbf16>, vector<32x64xbf16>, vector<8x64xf32> -> vector<8x64xf32>
    %c0_115 = arith.constant 0 : index
    %c0_116 = arith.constant 0 : index
    %276 = vector.load %arg18[%c0_115, %c0_116] : memref<1x64xf32, #tpu.memory_space<vmem>>, vector<1x64xf32>
    %277 = vector.broadcast %276 : vector<1x64xf32> to vector<8x64xf32>
    %278 = arith.addf %275, %277 : vector<8x64xf32>
    %cst_117 = arith.constant 5.000000e-01 : f32
    %279 = vector.broadcast %cst_117 : f32 to vector<8x64xf32>
    %280 = arith.mulf %279, %278 : vector<8x64xf32>
    %cst_118 = arith.constant 0.707106769 : f32
    %281 = vector.broadcast %cst_118 : f32 to vector<8x64xf32>
    %282 = arith.mulf %278, %281 : vector<8x64xf32>
    %283 = math.erf %282 : vector<8x64xf32>
    %cst_119 = arith.constant 1.000000e+00 : f32
    %284 = vector.broadcast %cst_119 : f32 to vector<8x64xf32>
    %285 = arith.addf %284, %283 : vector<8x64xf32>
    %286 = arith.mulf %280, %285 : vector<8x64xf32>
    %287 = arith.truncf %286 : vector<8x64xf32> to vector<8x64xbf16>
    %c0_120 = arith.constant 0 : index
    %c0_121 = arith.constant 0 : index
    %288 = vector.load %arg11[%c0_120, %c0_121] : memref<64x32xbf16, #tpu.memory_space<vmem>>, vector<64x32xbf16>
    %cst_122 = arith.constant dense<0.000000e+00> : vector<8x32xf32>
    %289 = tpu.matmul %287, %288, %cst_122 {dimension_numbers = #tpu.dot_dimension_numbers<[1], [0], [0], [1], [0, 0, 1, 1], [], []>} : vector<8x64xbf16>, vector<64x32xbf16>, vector<8x32xf32> -> vector<8x32xf32>
    %290 = vector.extract_strided_slice %6 {offsets = [3, 0], sizes = [1, 32], strides = [1, 1]} : vector<6x32xf32> to vector<1x32xf32>
    %291 = vector.broadcast %290 : vector<1x32xf32> to vector<8x32xf32>
    %292 = arith.addf %289, %291 : vector<8x32xf32>
    %293 = arith.addf %292, %272 : vector<8x32xf32>
    %294 = vector.extract_strided_slice %6 {offsets = [4, 0], sizes = [1, 32], strides = [1, 1]} : vector<6x32xf32> to vector<1x32xf32>
    %295 = vector.extract_strided_slice %6 {offsets = [5, 0], sizes = [1, 32], strides = [1, 1]} : vector<6x32xf32> to vector<1x32xf32>
    %cst_123 = arith.constant dense<0.000000e+00> : vector<8xf32>
    %296 = vector.multi_reduction <add>, %293, %cst_123 [1] : vector<8x32xf32> to vector<8xf32>
    %297 = vector.shape_cast %296 : vector<8xf32> to vector<8x1xf32>
    %cst_124 = arith.constant 3.200000e+01 : f32
    %298 = vector.broadcast %cst_124 : f32 to vector<8x1xf32>
    %299 = arith.divf %297, %298 : vector<8x1xf32>
    %300 = vector.broadcast %299 : vector<8x1xf32> to vector<8x32xf32>
    %301 = arith.subf %293, %300 : vector<8x32xf32>
    %302 = arith.mulf %301, %301 : vector<8x32xf32>
    %cst_125 = arith.constant dense<0.000000e+00> : vector<8xf32>
    %303 = vector.multi_reduction <add>, %302, %cst_125 [1] : vector<8x32xf32> to vector<8xf32>
    %304 = vector.shape_cast %303 : vector<8xf32> to vector<8x1xf32>
    %cst_126 = arith.constant 3.200000e+01 : f32
    %305 = vector.broadcast %cst_126 : f32 to vector<8x1xf32>
    %306 = arith.divf %304, %305 : vector<8x1xf32>
    %307 = vector.broadcast %299 : vector<8x1xf32> to vector<8x32xf32>
    %308 = arith.subf %293, %307 : vector<8x32xf32>
    %cst_127 = arith.constant 9.99999996E-13 : f32
    %309 = vector.broadcast %cst_127 : f32 to vector<8x1xf32>
    %310 = arith.addf %306, %309 : vector<8x1xf32>
    %311 = math.rsqrt %310 : vector<8x1xf32>
    %312 = vector.broadcast %311 : vector<8x1xf32> to vector<8x32xf32>
    %313 = arith.mulf %308, %312 : vector<8x32xf32>
    %314 = vector.broadcast %294 : vector<1x32xf32> to vector<8x32xf32>
    %315 = arith.mulf %313, %314 : vector<8x32xf32>
    %316 = vector.broadcast %295 : vector<1x32xf32> to vector<8x32xf32>
    %317 = arith.addf %315, %316 : vector<8x32xf32>
    %318 = arith.truncf %317 : vector<8x32xf32> to vector<8x32xbf16>
    %c0_128 = arith.constant 0 : index
    %c0_129 = arith.constant 0 : index
    %c0_130 = arith.constant 0 : index
    %319 = vector.load %arg19[%c0_128, %c0_129, %c0_130] : memref<1x8x32xbf16, #tpu.memory_space<vmem>>, vector<1x8x32xbf16>
    %320 = vector.shape_cast %319 : vector<1x8x32xbf16> to vector<8x32xbf16>
    %321 = vector.shape_cast %318 : vector<8x32xbf16> to vector<1x8x32xbf16>
    tpu.vector_store %arg19[%c0_128, %c0_129, %c0_130], %321 {strides = array<i32>} : memref<1x8x32xbf16, #tpu.memory_space<vmem>>, vector<1x8x32xbf16>,
    return
  }
  func.func @transform_0(%arg0: i32) -> (i32, i32, i32) {
    %c0_i32 = arith.constant 0 : i32
    %c0_i32_0 = arith.constant 0 : i32
    %c0_i32_1 = arith.constant 0 : i32
    return %arg0, %c0_i32, %c0_i32_0 : i32, i32, i32
  }
  func.func @transform_1(%arg0: i32) -> (i32, i32, i32) {
    %c0_i32 = arith.constant 0 : i32
    %c0_i32_0 = arith.constant 0 : i32
    %c0_i32_1 = arith.constant 0 : i32
    return %arg0, %c0_i32, %c0_i32_0 : i32, i32, i32
  }
  func.func @transform_2(%arg0: i32) -> (i32, i32) {
    %c0_i32 = arith.constant 0 : i32
    %c0_i32_0 = arith.constant 0 : i32
    %c0_i32_1 = arith.constant 0 : i32
    return %c0_i32, %c0_i32_0 : i32, i32
  }
  func.func @transform_3(%arg0: i32) -> (i32, i32) {
    %c0_i32 = arith.constant 0 : i32
    %c0_i32_0 = arith.constant 0 : i32
    %c0_i32_1 = arith.constant 0 : i32
    return %c0_i32, %c0_i32_0 : i32, i32
  }
  func.func @transform_4(%arg0: i32) -> (i32, i32) {
    %c0_i32 = arith.constant 0 : i32
    %c0_i32_0 = arith.constant 0 : i32
    %c0_i32_1 = arith.constant 0 : i32
    return %c0_i32, %c0_i32_0 : i32, i32
  }
  func.func @transform_5(%arg0: i32) -> (i32, i32) {
    %c0_i32 = arith.constant 0 : i32
    %c0_i32_0 = arith.constant 0 : i32
    %c0_i32_1 = arith.constant 0 : i32
    return %c0_i32, %c0_i32_0 : i32, i32
  }
  func.func @transform_6(%arg0: i32) -> (i32, i32) {
    %c0_i32 = arith.constant 0 : i32
    %c0_i32_0 = arith.constant 0 : i32
    %c0_i32_1 = arith.constant 0 : i32
    return %c0_i32, %c0_i32_0 : i32, i32
  }
  func.func @transform_7(%arg0: i32) -> (i32, i32) {
    %c0_i32 = arith.constant 0 : i32
    %c0_i32_0 = arith.constant 0 : i32
    %c0_i32_1 = arith.constant 0 : i32
    return %c0_i32, %c0_i32_0 : i32, i32
  }
  func.func @transform_8(%arg0: i32) -> (i32, i32) {
    %c0_i32 = arith.constant 0 : i32
    %c0_i32_0 = arith.constant 0 : i32
    %c0_i32_1 = arith.constant 0 : i32
    return %c0_i32, %c0_i32_0 : i32, i32
  }
  func.func @transform_9(%arg0: i32) -> (i32, i32) {
    %c0_i32 = arith.constant 0 : i32
    %c0_i32_0 = arith.constant 0 : i32
    %c0_i32_1 = arith.constant 0 : i32
    return %c0_i32, %c0_i32_0 : i32, i32
  }
  func.func @transform_10(%arg0: i32) -> (i32, i32) {
    %c0_i32 = arith.constant 0 : i32
    %c0_i32_0 = arith.constant 0 : i32
    %c0_i32_1 = arith.constant 0 : i32
    return %c0_i32, %c0_i32_0 : i32, i32
  }
  func.func @transform_11(%arg0: i32) -> (i32, i32) {
    %c0_i32 = arith.constant 0 : i32
    %c0_i32_0 = arith.constant 0 : i32
    %c0_i32_1 = arith.constant 0 : i32
    return %c0_i32, %c0_i32_0 : i32, i32
  }
  func.func @transform_12(%arg0: i32) -> (i32, i32) {
    %c0_i32 = arith.constant 0 : i32
    %c0_i32_0 = arith.constant 0 : i32
    %c0_i32_1 = arith.constant 0 : i32
    return %c0_i32, %c0_i32_0 : i32, i32
  }
  func.func @transform_13(%arg0: i32) -> (i32, i32) {
    %c0_i32 = arith.constant 0 : i32
    %c0_i32_0 = arith.constant 0 : i32
    %c0_i32_1 = arith.constant 0 : i32
    return %c0_i32, %c0_i32_0 : i32, i32
  }
  func.func @transform_14(%arg0: i32) -> (i32, i32) {
    %c0_i32 = arith.constant 0 : i32
    %c0_i32_0 = arith.constant 0 : i32
    %c0_i32_1 = arith.constant 0 : i32
    return %c0_i32, %c0_i32_0 : i32, i32
  }
  func.func @transform_15(%arg0: i32) -> (i32, i32) {
    %c0_i32 = arith.constant 0 : i32
    %c0_i32_0 = arith.constant 0 : i32
    %c0_i32_1 = arith.constant 0 : i32
    return %c0_i32, %c0_i32_0 : i32, i32
  }
  func.func @transform_16(%arg0: i32) -> (i32, i32) {
    %c0_i32 = arith.constant 0 : i32
    %c0_i32_0 = arith.constant 0 : i32
    %c0_i32_1 = arith.constant 0 : i32
    return %c0_i32, %c0_i32_0 : i32, i32
  }
  func.func @transform_17(%arg0: i32) -> (i32, i32) {
    %c0_i32 = arith.constant 0 : i32
    %c0_i32_0 = arith.constant 0 : i32
    %c0_i32_1 = arith.constant 0 : i32
    return %c0_i32, %c0_i32_0 : i32, i32
  }
  func.func @transform_18(%arg0: i32) -> (i32, i32, i32) {
    %c0_i32 = arith.constant 0 : i32
    %c0_i32_0 = arith.constant 0 : i32
    %c0_i32_1 = arith.constant 0 : i32
    return %arg0, %c0_i32, %c0_i32_0 : i32, i32, i32
  }
}

</mosaic_0001>

<bundles_post_ra>
// kernel: tpu_custom_call.1
= control target key start
LH: loop header
LB: loop body
LE: loop exit
PB: predicated region body
PF: predicated region fallthrough
CT: control target
= control target key end

     0   :  { %s3006_s0 = inlined_call_operand.vmem [shape: bf16[2,8,32], index: 0, kind: input, shape index: {}]   ;;  %s3007_s1 = inlined_call_operand.vmem [shape: f32[2,1,8], index: 1, kind: input, shape index: {}]   ;;  %s3008_s2 = inlined_call_operand.vmem [shape: bf16[32,16], index: 2, kind: input, shape index: {}]   ;;  %s3009_s3 = inlined_call_operand.vmem [shape: bf16[32,16], index: 3, kind: input, shape index: {}]   ;;  %s3010_s4 = inlined_call_operand.vmem [shape: bf16[32,16], index: 4, kind: input, shape index: {}]   ;;  %s3011_s5 = inlined_call_operand.vmem [shape: bf16[32,16], index: 5, kind: input, shape index: {}]   ;;  %s3012_s6 = inlined_call_operand.vmem [shape: bf16[16,14], index: 6, kind: input, shape index: {}]   ;;  %s3013_s7 = inlined_call_operand.vmem [shape: bf16[32,16], index: 7, kind: input, shape index: {}]   ;;  %s3014_s8 = inlined_call_operand.vmem [shape: bf16[32,32], index: 8, kind: input, shape index: {}]   ;;  %s3015_s9 = inlined_call_operand.vmem [shape: bf16[32,64], index: 9, kind: input, shape index: {}]   ;;  %s3016_s10 = inlined_call_operand.vmem [shape: bf16[64,32], index: 10, kind: input, shape index: {}]   ;;  %s3017_s11 = inlined_call_operand.vmem [shape: f32[7,32], index: 11, kind: input, shape index: {}]   ;;  %s3018_s12 = inlined_call_operand.vmem [shape: bf16[14,14], index: 12, kind: input, shape index: {}]   ;;  %s3019_s13 = inlined_call_operand.vmem [shape: bf16[14,112], index: 13, kind: input, shape index: {}]   ;;  %s3020_s14 = inlined_call_operand.vmem [shape: f32[5,16], index: 14, kind: input, shape index: {}]   ;;  %s3021_s15 = inlined_call_operand.vmem [shape: f32[6,32], index: 15, kind: input, shape index: {}]   ;;  %s3022_s16 = inlined_call_operand.vmem [shape: f32[1,14], index: 16, kind: input, shape index: {}]   ;;  %s3023_s17 = inlined_call_operand.vmem [shape: f32[1,64], index: 17, kind: input, shape index: {}]   ;;  %s3024_s18 = inlined_call_operand.hbm [shape: bf16[2,8,32], index: 18, kind: output, shape index: {}]  }
   0x1   :  { %3030 = sst [smem:[#allocation12_spill]] %s3006_s0 }
   0x2   :  { %3031 = sst [smem:[#allocation13_spill]] %s3007_s1 }
   0x3   :  { %3032 = sst [smem:[#allocation14_spill]] %s3008_s2 }
   0x4   :  { %3033 = sst [smem:[#allocation15_spill]] %s3009_s3 }
   0x5   :  { %3034 = sst [smem:[#allocation16_spill]] %s3010_s4 }
   0x6   :  { %3035 = sst [smem:[#allocation17_spill]] %s3011_s5 }
   0x7   :  { %23 = vsyncpa [#allocation7], 0 }
   0x8   :  { %25 = vsyncpa [#allocation7 + $0x1], 0  ;;  %s2592_s27 = smov 0   ;;  %s2594_s28 = smov 0  }
   0x9   :  { %s2596_s29 = smov 0   ;;  %s2598_s30 = smov 0  }
   0xa LB: > { %3036 = sst [smem:[#allocation9_spill]] %s2479_s29  ;;  %s2613_s0 = sadd.s32 4294967295, %s2483_s30   ;;  %s2483_s30 = sphi %s2598_s30, %s3047_s30   ;;  %s2479_s29 = sphi %s2596_s29, %s3049_s29   ;;  %s2475_s28 = sphi %s2594_s28, %s3051_s28   ;;  %s2471_s27 = sphi %s2592_s27, %s3050_s27  }
   0xb   : > { %s2073_s19 = sadd.s32 4294967294, %s2483_s30   ;;  %s2617_s1 = sadd.s32 1, %s2483_s30  }
   0xc   : > { %3037 = sst [smem:[#allocation10_spill]] %s2617_s1  ;;  %s426_s20 = sadd.s32 1, %s2479_s29 }
   0xd   : > { %s423_s21 = ssub.s32 %s2483_s30, %s2617_s1  ;;  %p436_p0 = scmp.ne.s32.totalorder %s2479_s29, %s2475_s28 }
   0xe   : > { %p424_p1 = scmp.eq.s32.totalorder %s423_s21, 0  ;;  %p437_p2 = scmp.eq.s32.totalorder %s2613_s0, 1 }
   0xf   : > { %p442_p3 = scmp.ne.s32.totalorder %s2475_s28, %s2471_s27  ;;  %p443_p4 = scmp.eq.s32.totalorder %s2073_s19, 1 }
  0x10   : > { %s2628_s22 = scalar_select %p424_p1, %s2479_s29, %s426_s20  }
  0x11   : > { %p2630_p5 = por %p437_p2, %p436_p0  ;;  %p2634_p6 = por %p443_p4, %p442_p3 }
  0x12   : > { %3038 = sst [smem:[#allocation11_spill]] %s2628_s22  ;;  %p2076_p7 = scmp.ge.s32.totalorder %s2483_s30, 1 }
  0x13   : > { %p522_p8 = scmp.lt.s32.totalorder %s2483_s30, 3 }
  0x15   : > { %p523_p9 = pnand %p2076_p7, %p522_p8 }
  0x16   : > { %s3041_s26 = sld [smem:[#allocation14_spill]] (!%p523_p9)  ;;  %p578_p10 = scmp.lt.s32.totalorder (!%p523_p9), %s2613_s0, 1 }
  0x17   : > { %526 = sbr.rel (%p523_p9) target bundleno = 2927 (0xb6f), region = 92  ;;  %s3042_s3 = sld [smem:[#allocation15_spill]] (!%p523_p9) }
  0x18   : > { %s3043_s22 = sld [smem:[#allocation12_spill]] (!%p523_p9)  ;;  %s2488_s19 = smov (!%p523_p9), 64  }
  0x19   : > { %s3044_s5 = sld [smem:[#allocation17_spill]] (!%p523_p9)  ;;  %s2492_s1 = smov (!%p523_p9), 96  }
  0x1a   : > { %s3045_s4 = sld [smem:[#allocation16_spill]] (!%p523_p9)  ;;  %s575_s25 = sand.u32 (!%p523_p9), 1, %s2475_s28  }
  0x1b   : > { %s1992_s20 = scalar_lea.sflag (!%p523_p9), [#allocation7], %s575_s25 }
  0x1c   : > { %v2384_v0 = vld [vmem:[%s3041_s26 + $0x8] sm:$0xff]   ;;  %v595_v1 = vlaneseq  ;;  %v2485_v2 = vmov 0.0   ;;  %v2385_v3 = vld [vmem:[%s3041_s26] sm:$0xff]   ;;  %vm2486_vm0 = vmmov 0   ;;  %s2657_s21 = scalar_select %p578_p10, %s2613_s0, 1  ;;  %vm611_vm1 = vcmask 261120  }
  0x1d   : > { %2188 = vmatprep.subr.bf16.mxu1 %v2485_v2  ;;  %2204 = vmatprep.subr.bf16.mxu0 %v2485_v2  ;;  %v2386_v5 = vld [vmem:[%s3042_s3 + $0x8] sm:$0xff]   ;;  %v814_v9 = vld [vmem:[%s3017_s11] sm:$0x7f]  ;;  %vm776_vm8 = vcmask 60416   ;;  %s2490_s26 = smov 32   ;;  %vm961_vm9 = vcmask 130048  }
  0x1e   : > { %2189 = vmatpush3.bf16.msra.mxu1 %v2384_v0  ;;  %2192 = vmatprep.mubr.msk.bf16.mxu1 %vm2486_vm0, %v2485_v2  ;;  %v2652_v4 = vshrl.u32 %v595_v1, 7  ;;  %s2078_s24 = sshll.u32 %s2657_s21, 2  ;;  %v2387_v13 = vld [vmem:[%s3042_s3] sm:$0xff]   ;;  %vm1005_vm10 = vcmask 113664   ;;  %vm1023_vm11 = vcmask 1046528   ;;  %vm1492_vm12 = vcmask 64512  }
  0x1f   : > { %2190 = vmatprep.subr.bf16.mxu1 %v2485_v2  ;;  %2208 = vmatprep.mubr.msk.bf16.mxu0 %vm2486_vm0, %v2485_v2  ;;  %s581_s29 = scalar_lea.vmem %s3043_s22, %s2078_s24  ;;  %v2388_v22 = vld [vmem:[%s3044_s5 + $0x8] sm:$0xff]   ;;  %v2389_v36 = vld [vmem:[%s3044_s5] sm:$0xff]   ;;  %s2491_s22 = smov 80   ;;  %vm1624_vm13 = vcmask 1043456   ;;  %vm1486_vm14 = vcmask 257152   ;;  %vm1720_vm15 = vcmask 125952  }
  0x20   : > { %v2664_v6 = vsub.s32 0, %v2652_v4  ;;  %v2667_v7 = vsub.s32 1, %v2652_v4  ;;  %v2674_v8 = vsub.s32 2, %v2652_v4  ;;  %vm808_vm2 = vcmp.ge.s32.totalorder %v2652_v4, 3  ;;  %v2680_v10 = vld [vmem:[%s581_s29] sm:$0xf] }
  0x21   : > { %vm809_vm3 = vcmp.ge.s32.totalorder %v2652_v4, 2  ;;  %vm810_vm4 = vcmp.ge.s32.totalorder %v2652_v4, 1  ;;  %vm811_vm5 = vcmp.lt.s32.totalorder %v2652_v4, 7  ;;  %v2686_v11 = vsub.s32 3, %v2652_v4  ;;  %v2390_v52 = vld [vmem:[%s3045_s4 + $0x8] sm:$0xff]   ;;  %s2487_s29 = smov 112  }
  0x22   : > { %2191 = vmatpush3.bf16.msra.mxu1 %v2385_v3  ;;  %v2689_v12 = vunpack.c.l.bf16 %v2680_v10  ;;  %vm812_vm6 = vcmp.lt.s32.totalorder %v2652_v4, 6  ;;  %vm813_vm7 = vcmp.lt.s32.totalorder %v2652_v4, 5  ;;  %v2699_v14 = vsub.s32 4, %v2652_v4  ;;  %v2754_v53 = vld [vmem:[%s3019_s13] sm:$0x7f]   ;;  %2205 = vmatpush3.bf16.msra.mxu0 %v2390_v52 }
  0x23   : > { %2196 = vmatprep.subr.bf16.mxu1 %v2485_v2  ;;  %v818_v15 = vrot.slane %v814_v9, %v2686_v11  ;;  %v827_v16 = vrot.slane %v814_v9, %v2664_v6  ;;  %v837_v17 = vrot.slane %v814_v9, %v2667_v7  ;;  %v847_v24 = vrot.slane %v814_v9, %v2674_v8  ;;  %v2392_v54 = vld [vmem:[%s3045_s4] sm:$0xff]   ;;  %s2496_s4 = smov [#allocation6]  }
  0x24   : > { %v820_v18 = vrot.slane %v2689_v12, 5  ;;  %v830_v19 = vrot.slane %v2689_v12, 6  ;;  %v840_v20 = vrot.slane %v2689_v12, 7  ;;  %v850_v21 = vrot.slane %v2689_v12, 1  ;;  %1234 = vrot.lane.b32.xlu1 %v2754_v53, %s2487_s29  ;;  %2206 = vmatprep.subr.bf16.mxu0 %v2485_v2  ;;  %v2393_v55 = vld [vmem:[%s3012_s6] sm:$0xff]   ;;  %s2489_s29 = smov 120  }
  0x25   : > { %2193 = vmatmul.mubr.msk.bf16.vlgmr.msra.gmra.mxu1 %vm611_vm1, %v2680_v10  ;;  %v819_v23 = vmul.f32 %v818_v15, %v2689_v12  ;;  %v866_v25 = vsub.s32 5, %v2652_v4  ;;  %v876_v26 = vsub.s32 6, %v2652_v4  ;;  %v860_v30 = vrot.slane %v2689_v12, 2  ;;  %v2774_v56 = vld [vmem:[%s3020_s14] sm:$0x1f]  ;;  %s2427_s5 = sshll.u32 %s2496_s4, 4  ;;  %s2428_s5 = int_to_ptr.vmem [resolvable:$false] %s2427_s5 }
  0x26   : > { %2197 = vmatpush3.bf16.msra.mxu1 %v2386_v5  ;;  %2200 = vmatprep.mubr.msk.bf16.mxu1 %vm2486_vm0, %v2485_v2  ;;  %v823_v27 = vsel %vm808_vm2, %v820_v18, 0.0  ;;  %v833_v28 = vsel %vm809_vm3, %v830_v19, 0.0  ;;  %v843_v29 = vsel %vm810_vm4, %v840_v20, 0.0  ;;  %v857_v33 = vrot.slane %v814_v9, %v2699_v14  ;;  %v2396_v52 = vld [vmem:[%s3013_s7] sm:$0xff]  }
  0x27   : > { %2198 = vmatprep.subr.bf16.mxu1 %v2485_v2  ;;  %v828_v31 = vmul.f32 %v827_v16, %v823_v27  ;;  %v838_v32 = vmul.f32 %v837_v17, %v833_v28  ;;  %v853_v34 = vsel %vm811_vm5, %v850_v21, 0.0  ;;  %v870_v35 = vrot.slane %v2689_v12, 3  ;;  %2207 = vmatpush3.bf16.msra.mxu0 %v2392_v54 }
  0x28   : > { %v848_v38 = vmul.f32 %v847_v24, %v843_v29  ;;  %v867_v39 = vrot.slane %v814_v9, %v866_v25  ;;  %v863_v40 = vsel %vm812_vm6, %v860_v30, 0.0  ;;  %v858_v43 = vmul.f32 %v857_v33, %v853_v34  ;;  %1332 = vrot.lane.b32.xlu1 %v2754_v53, %s2488_s19  ;;  %2220 = vmatprep.subr.bf16.mxu0 %v2485_v2 }
  0x29   : > { %v829_v37 = vadd.f32 %v828_v31, %v819_v23  ;;  %v873_v41 = vsel %vm813_vm7, %v870_v35, 0.0  ;;  %v877_v44 = vrot.slane %v814_v9, %v876_v26  ;;  %v598_v57 = vrot.slane %v2774_v56, %v2664_v6 }
  0x2a   : > { %2199 = vmatpush3.bf16.msra.mxu1 %v2387_v13  ;;  %v868_v46 = vmul.f32 %v867_v39, %v863_v40  ;;  %2209 = vmatmul.mubr.msk.bf16.vlgmr.msra.gmra.mxu0 %vm611_vm1, %v2680_v10  ;;  %v662_v63 = vrot.slane %v2774_v56, %v2667_v7  ;;  %v888_v16 = vrot.slane %v2774_v56, %v2686_v11 }
  0x2b   : > { %2212 = vmatprep.subr.bf16.mxu1 %v2485_v2  ;;  %v839_v42 = vadd.f32 %v838_v32, %v829_v37  ;;  %v878_v48 = vmul.f32 %v877_v44, %v873_v41  ;;  %2222 = vmatprep.mubr.msk.bf16.mxu0 %vm2486_vm0, %v2485_v2  ;;  %v722_v24 = vrot.slane %v2774_v56, %v2674_v8  ;;  %v2094_v37 = vld [vmem:[%s3022_s16] ss:$0 sm:$0xff] }
  0x2c   : > { %2221 = vmatpush3.bf16.msra.mxu0 %v2393_v55  ;;  %v2394_v44 = vld [vmem:[%s3018_s12] sm:$0x7f]  }
  0x2d   : > { %2201 = vmatmul.mubr.msk.bf16.vlgmr.msra.gmra.mxu1 %vm611_vm1, %v2680_v10  ;;  %v849_v45 = vadd.f32 %v848_v38, %v839_v42  ;;  %2232 = vmatprep.subr.bf16.mxu0 %v2485_v2 }
  0x2e   : > { %2213 = vmatpush3.bf16.msra.mxu1 %v2388_v22  ;;  %2216 = vmatprep.mubr.msk.bf16.mxu1 %vm2486_vm0, %v2485_v2 }
  0x2f   : > { %2214 = vmatprep.subr.bf16.mxu1 %v2485_v2  ;;  %v859_v47 = vadd.f32 %v858_v43, %v849_v45  ;;  %v1025_v45 = vsel %vm1023_vm11, %v2394_v44, 0 }
  0x31   : > { %v869_v49 = vadd.f32 %v868_v46, %v859_v47 }
  0x32   : > { %2215 = vmatpush3.bf16.msra.mxu1 %v2389_v36 }
  0x33   : > { %2226 = vmatprep.subr.bf16.mxu1 %v2485_v2  ;;  %v879_v50 = vadd.f32 %v878_v48, %v869_v49 }
  0x35   : > { %v880_v51 = vpack.c.bf16 %v879_v50, %v879_v50 }
  0x37   : > { %2217 = vmatmul.mubr.msk.bf16.vlgmr.msra.gmra.mxu1 %vm611_vm1, %v880_v51  ;;  %v2395_v51 = vld [vmem:[%s3013_s7 + $0x8] sm:$0xff]  }
  0x38   : > { %2228 = vmatprep.mubr.msk.bf16.mxu1 %vm2486_vm0, %v2485_v2  ;;  %2227 = vmatpush3.bf16.msra.mxu1 %v1025_v45 }
  0x39   : > { %2240 = vmatprep.subr.bf16.mxu1 %v2485_v2 }
  0x96   : > { %v1235_v32 = vpop.permute.xlu1 %1234 }
  0x9a   : > { %v2795_v33 = vpop.permute.xlu1 %1332 }
  0xe5   : > { %v649_v58 = vpop.f32.mrf.mxu1 }
  0xe6   : > { %v650_v59 = vadd.f32 %v649_v58, %v598_v57  ;;  %v1188_v57 = vsel %vm1023_vm11, %v2754_v53, 0 }
  0xe7   : > { %v2194_v60 = vpop.f32.mrf.mxu1 }
  0xe8   : > { %v775_v61 = vpack.c.bf16 %v650_v59, %v650_v59 }
  0xe9   : > { %v652_v62 = vpop.f32.mrf.mxu1 }
  0xea   : > { %777 = vst.msk [vmem:[#allocation3] sm:$0xf] %vm776_vm8, %v775_v61  ;;  %v769_v26 = vpop.f32.mrf.mxu0 }
  0xeb   : > { %v2195_v0 = vpop.f32.mrf.mxu1  ;;  %v770_v27 = vadd.f32 %v769_v26, %v722_v24 }
  0xec   : > { %v2210_v28 = vpop.f32.mrf.mxu0 }
  0xed   : > { %v709_v1 = vpop.f32.mrf.mxu1  ;;  %v2791_v29 = vpack.c.bf16 %v770_v27, %v770_v27 }
  0xee   : > { %v710_v3 = vadd.f32 %v709_v1, %v662_v63  ;;  %v772_v30 = vpop.f32.mrf.mxu0  ;;  %v1237_v1 = vsel %vm1023_vm11, %v1235_v32, 0 }
  0xef   : > { %v2202_v5 = vpop.f32.mrf.mxu1  ;;  %781 = vst.msk [vmem:[#allocation5] sm:$0xf] %vm776_vm8, %v2791_v29  ;;  %v1078_v30 = vrot.slane %v2774_v56, %v2699_v14 }
  0xf0   : > { %v778_v9 = vpack.c.bf16 %v710_v3, %v710_v3  ;;  %v2211_v31 = vpop.f32.mrf.mxu0 }
  0xf1   : > { %v712_v13 = vpop.f32.mrf.mxu1 }
  0xf2   : > { %779 = vst.msk [vmem:[#allocation4] sm:$0xf] %vm776_vm8, %v778_v9  ;;  %793 = vrot.lane.b32.xlu1 %v778_v9, %s2489_s29  ;;  %v1335_v9 = vsel %vm1023_vm11, %v2795_v33, 0 }
  0xf3   : > { %v2203_v15 = vpop.f32.mrf.mxu1 }
  0xf6   : > { %1430 = vrot.lane.b32.xlu1 %v2754_v53, %s2490_s26  ;;  %s2493_s26 = smov 48  }
  0xf7   : > { %v938_v17 = vpop.f32.mrf.mxu1 }
  0xf8   : > { %v939_v18 = vadd.f32 %v938_v17, %v888_v16 }
  0xf9   : > { %v2218_v19 = vpop.f32.mrf.mxu1  ;;  %v1490_v15 = vld [vmem:[#allocation4] sm:$0xf] }
  0xfa   : > { %785 = vrot.lane.b32.xlu1 %v775_v61, %s2489_s29  ;;  %v944_v20 = vmul.f32 %v939_v18, %v650_v59  ;;  %v1497_v17 = vsel %vm1492_vm12, %v1490_v15, 0  ;;  %v1619_v19 = vld [vmem:[#allocation5] sm:$0xf] }
  0xfb   : > { %v941_v21 = vpop.f32.mrf.mxu1 }
  0xfc   : > { %v945_v22 = vpack.c.bf16 %v944_v20, %v944_v20  ;;  %v1488_v20 = vld [vmem:[#allocation3] sm:$0xf] }
  0xfd   : > { %v2219_v23 = vpop.f32.mrf.mxu1 }
  0xfe   : > { %2223 = vmatmul.mubr.msk.bf16.vlgmr.msra.gmra.mxu0 %vm961_vm9, %v945_v22  ;;  %1283 = vrot.lane.b32.xlu1 %v2754_v53, %s2492_s1  ;;  %v1626_v22 = vsel %vm1624_vm13, %v1619_v19, 0  ;;  %s2129_s1 = sshll.u32 %s2613_s0, 6  ;;  %s2429_s0 = scalar_lea.vmem %s2428_s5, 128 }
  0xff   : > { %2236 = vmatprep.mubr.msk.bf16.mxu0 %vm2486_vm0, %v2485_v2  ;;  %2233 = vmatpush3.bf16.msra.mxu0 %v2395_v51  ;;  %s2003_s19 = scalar_lea.hbm %s3024_s18, %s2129_s1 }
 0x100   : > { %2234 = vmatprep.subr.bf16.mxu0 %v2485_v2 }
 0x102   : > { %1381 = vrot.lane.b32.xlu1 %v2754_v53, %s2493_s26  ;;  %s3046_s26 = sld [smem:[#allocation13_spill]] }
 0x103   : > { %2235 = vmatpush3.bf16.msra.mxu0 %v2396_v52 }
 0x104   : > { %2246 = vmatprep.subr.bf16.mxu0 %v2485_v2 }
 0x106   : > { %2237 = vmatmul.mubr.msk.bf16.vlgmr.msra.gmra.mxu0 %vm611_vm1, %v2680_v10 }
 0x107   : > { %2248 = vmatprep.mubr.msk.bf16.mxu0 %vm2486_vm0, %v2485_v2  ;;  %2247 = vmatpush3.bf16.msra.mxu0 %v1188_v57 }
 0x108   : > { %2258 = vmatprep.subr.bf16.mxu0 %v2485_v2  ;;  %s584_s24 = scalar_lea.vmem %s3046_s26, %s2657_s21  ;;  %s2494_s21 = smov 16  }
 0x164   : > { %v794_v34 = vpop.permute.xlu1 %793 }
 0x165   : > { %797 = vst.msk [vmem:[#allocation4 + $0x4] sm:$0xf] %vm776_vm8, %v794_v34 }
 0x168   : > { %v2798_v35 = vpop.permute.xlu1 %1430 }
 0x169   : > { %v1433_v16 = vsel %vm1023_vm11, %v2798_v35, 0 }
 0x16c   : > { %v786_v36 = vpop.permute.xlu1 %785  ;;  %v1491_v18 = vld [vmem:[#allocation4 + $0x4] sm:$0xf] }
 0x16d   : > { %789 = vst.msk [vmem:[#allocation3 + $0x4] sm:$0xf] %vm776_vm8, %v786_v36  ;;  %v1543_v21 = vsel %vm1492_vm12, %v1491_v18, 0 }
 0x170   : > { %v1284_v63 = vpop.permute.xlu1 %1283 }
 0x174   : > { %v1382_v5 = vpop.permute.xlu1 %1381  ;;  %v1489_v23 = vld [vmem:[#allocation3 + $0x4] sm:$0xf] }
 0x175   : > { %v1384_v13 = vsel %vm1023_vm11, %v1382_v5, 0 }
 0x1be   : > { %v999_v38 = vpop.f32.mrf.mxu0 }
 0x1bf   : > { %v1000_v39 = vadd.f32 %v2094_v37, %v999_v38 }
 0x1c0   : > { %v2224_v40 = vpop.f32.mrf.mxu0 }
 0x1c1   : > { %v1006_v41 = vsel %vm1005_vm10, %v1000_v39, -inf }
 0x1c2   : > { %1007 = vmax.xlane.f32.xlu0 %v1006_v41  ;;  %v1002_v42 = vpop.f32.mrf.mxu0 }
 0x1c4   : > { %v2225_v43 = vpop.f32.mrf.mxu0 }
 0x1c6   : > { %v1125_v24 = vpop.f32.mrf.mxu0 }
 0x1c7   : > { %v1126_v31 = vadd.f32 %v1125_v24, %v1078_v30 }
 0x1c8   : > { %v2238_v26 = vpop.f32.mrf.mxu0 }
 0x1c9   : > { %v1230_v32 = vrot.slane %v1126_v31, 5  ;;  %v1279_v40 = vrot.slane %v1126_v31, 6  ;;  %v1328_v41 = vrot.slane %v1126_v31, 7  ;;  %v1426_v57 = vrot.slane %v1126_v31, 2  ;;  %v2113_v26 = vld [vmem:[%s584_s24] ss:$0 sm:$0xff] }
 0x1ca   : > { %v1128_v27 = vpop.f32.mrf.mxu0  ;;  %v1475_v15 = vrot.slane %v1126_v31, 3 }
 0x1cb   : > { %v1231_v33 = vsel %vm808_vm2, %v1230_v32, 0.0  ;;  %v1280_v56 = vsel %vm809_vm3, %v1279_v40, 0.0 }
 0x1cc   : > { %v2239_v28 = vpop.f32.mrf.mxu0 }
 0x1d8   : > { %1138 = vrot.lane.b32.xlu0 %v2754_v53, %s2491_s22  ;;  %v1286_v53 = vsel %vm1023_vm11, %v1284_v63, 0  ;;  %s2495_s22 = smov 8  }
 0x24b   : > { %v1008_v46 = vpop.xlane.xlu0 %1007 }
 0x24c   : > { %v1009_v47 = vsub.f32 %v1000_v39, %v1008_v46 }
 0x24e   : > { %v1010_v48 = vmul.f32 1.442695, %v1009_v47  ;;  %v1329_v47 = vsel %vm810_vm4, %v1328_v41, 0.0 }
 0x24f   : > { %v1139_v54 = vpop.permute.xlu0 %1138 }
 0x250   : > { %2405 = vpow2.f32 %v1010_v48  ;;  %v1144_v55 = vsel %vm1023_vm11, %v1139_v54, 0 }
 0x25d   : > { %v2406_v49 = vpop.eup %2405 }
 0x25e   : > { %v1012_v50 = vpack.c.bf16 %v2406_v49, %v2406_v49 }
 0x260   : > { %2229 = vmatmul.mubr.msk.bf16.vlgmr.msra.gmra.mxu1 %vm1005_vm10, %v1012_v50 }
 0x261   : > { %2242 = vmatprep.mubr.msk.bf16.mxu1 %vm2486_vm0, %v2485_v2  ;;  %2241 = vmatpush3.bf16.msra.mxu1 %v1144_v55  ;;  %v1377_v55 = vrot.slane %v1126_v31, 1 }
 0x262   : > { %2252 = vmatprep.subr.bf16.mxu1 %v2485_v2 }
 0x263   : > { %v1378_v63 = vsel %vm811_vm5, %v1377_v55, 0.0 }
 0x320   : > { %v1061_v58 = vpop.f32.mrf.mxu1 }
 0x321   : > { %v1067_v59 = vmax.f32 %v1061_v58, 1e-30 }
 0x322   : > { %v2230_v60 = vpop.f32.mrf.mxu1 }
 0x323   : > { %2407 = vrcp.f32 %v1067_v59 }
 0x324   : > { %v1064_v10 = vpop.f32.mrf.mxu1 }
 0x326   : > { %v2231_v61 = vpop.f32.mrf.mxu1 }
 0x330   : > { %v2408_v62 = vpop.eup %2407 }
 0x331   : > { %v1069_v0 = vmul.f32 %v2408_v62, %v2406_v49 }
 0x333   : > { %v1070_v3 = vpack.c.bf16 %v1069_v0, %v1069_v0  ;;  %v1427_v0 = vsel %vm812_vm6, %v1426_v57, 0.0 }
 0x335   : > { %2243 = vmatmul.mubr.msk.bf16.vlgmr.msra.gmra.mxu1 %vm1005_vm10, %v1070_v3  ;;  %2249 = vmatmul.mubr.msk.bf16.vlgmr.msra.gmra.mxu0 %vm1005_vm10, %v1070_v3 }
 0x336   : > { %2253 = vmatpush3.bf16.msra.mxu1 %v1237_v1  ;;  %2259 = vmatpush3.bf16.msra.mxu0 %v1286_v53 }
 0x337   : > { %2254 = vmatprep.mubr.msk.bf16.mxu1 %vm2486_vm0, %v2485_v2  ;;  %2260 = vmatprep.mubr.msk.bf16.mxu0 %vm2486_vm0, %v2485_v2 }
 0x338   : > { %2264 = vmatprep.subr.bf16.mxu1 %v2485_v2  ;;  %2270 = vmatprep.subr.bf16.mxu0 %v2485_v2 }
 0x33d   : > { %2255 = vmatmul.mubr.msk.bf16.vlgmr.msra.gmra.mxu1 %vm1005_vm10, %v1070_v3  ;;  %2261 = vmatmul.mubr.msk.bf16.vlgmr.msra.gmra.mxu0 %vm1005_vm10, %v1070_v3 }
 0x33e   : > { %2265 = vmatpush3.bf16.msra.mxu1 %v1335_v9  ;;  %2271 = vmatpush3.bf16.msra.mxu0 %v1384_v13 }
 0x33f   : > { %2266 = vmatprep.mubr.msk.bf16.mxu1 %vm2486_vm0, %v2485_v2  ;;  %2272 = vmatprep.mubr.msk.bf16.mxu0 %vm2486_vm0, %v2485_v2 }
 0x340   : > { %2282 = vmatprep.subr.bf16.mxu0 %v2485_v2  ;;  %2276 = vmatprep.subr.bf16.mxu1 %v2485_v2 }
 0x345   : > { %2267 = vmatmul.mubr.msk.bf16.vlgmr.msra.gmra.mxu1 %vm1005_vm10, %v1070_v3  ;;  %2273 = vmatmul.mubr.msk.bf16.vlgmr.msra.gmra.mxu0 %vm1005_vm10, %v1070_v3 }
 0x346   : > { %2283 = vmatpush3.bf16.xpose.msra.mxu0 %v1497_v17  ;;  %2277 = vmatpush3.bf16.msra.mxu1 %v1433_v16 }
 0x347   : > { %2278 = vmatprep.mubr.msk.bf16.mxu1 %vm2486_vm0, %v2485_v2  ;;  %2284 = vmatprep.mubr.msk.bf16.mxu0 %vm2486_vm0, %v2485_v2 }
 0x348   : > { %2288 = vmatprep.subr.bf16.mxu1 %v2485_v2  ;;  %2294 = vmatprep.subr.bf16.mxu0 %v2485_v2 }
 0x34d   : > { %2279 = vmatmul.mubr.msk.bf16.vlgmr.msra.gmra.mxu1 %vm1005_vm10, %v1070_v3  ;;  %2285 = vmatmul.mubr.msk.bf16.vlgmr.msra.gmra.mxu0 %vm1492_vm12, %v1488_v20 }
 0x34e   : > { %2289 = vmatpush3.bf16.xpose.msra.mxu1 %v1543_v21  ;;  %2295 = vmatpush3.bf16.msra.mxu0 %v1626_v22  ;;  %v1476_v22 = vsel %vm813_vm7, %v1475_v15, 0.0 }
 0x34f   : > { %2290 = vmatprep.mubr.msk.bf16.mxu1 %vm2486_vm0, %v2485_v2  ;;  %2296 = vmatprep.mubr.msk.bf16.mxu0 %vm2486_vm0, %v2485_v2 }
 0x350   : > { %2300 = vmatprep.subr.bf16.mxu1 %v2485_v2  ;;  %2306 = vmatprep.subr.bf16.mxu0 %v2485_v2 }
 0x355   : > { %2291 = vmatmul.mubr.msk.bf16.vlgmr.msra.gmra.mxu1 %vm1492_vm12, %v1489_v23 }
 0x356   : > { %2302 = vmatprep.mubr.msk.bf16.mxu1 %vm2486_vm0, %v2485_v2 }
 0x3f5   : > { %v1180_v34 = vpop.f32.mrf.mxu1  ;;  %v1224_v35 = vpop.f32.mrf.mxu0 }
 0x3f6   : > { %v1186_v36 = vmul.f32 %v1180_v34, %v1126_v31  ;;  %v1232_v37 = vmul.f32 %v1231_v33, %v1224_v35 }
 0x3f7   : > { %v2244_v38 = vpop.f32.mrf.mxu1  ;;  %v2250_v39 = vpop.f32.mrf.mxu0 }
 0x3f8   : > { %v1233_v42 = vadd.f32 %v1232_v37, %v1186_v36 }
 0x3f9   : > { %v1183_v43 = vpop.f32.mrf.mxu1  ;;  %v1227_v44 = vpop.f32.mrf.mxu0 }
 0x3fb   : > { %v2245_v45 = vpop.f32.mrf.mxu1  ;;  %v2251_v46 = vpop.f32.mrf.mxu0 }
 0x3fd   : > { %v1273_v48 = vpop.f32.mrf.mxu1  ;;  %v1322_v49 = vpop.f32.mrf.mxu0 }
 0x3fe   : > { %v1281_v50 = vmul.f32 %v1280_v56, %v1273_v48  ;;  %v1330_v51 = vmul.f32 %v1329_v47, %v1322_v49 }
 0x3ff   : > { %v2256_v52 = vpop.f32.mrf.mxu1  ;;  %v2262_v54 = vpop.f32.mrf.mxu0 }
 0x400   : > { %v1282_v58 = vadd.f32 %v1281_v50, %v1233_v42 }
 0x401   : > { %v1276_v59 = vpop.f32.mrf.mxu1  ;;  %v1325_v60 = vpop.f32.mrf.mxu0 }
 0x402   : > { %v1331_v10 = vadd.f32 %v1330_v51, %v1282_v58 }
 0x403   : > { %v2257_v61 = vpop.f32.mrf.mxu1  ;;  %v2263_v62 = vpop.f32.mrf.mxu0 }
 0x405   : > { %v1371_v1 = vpop.f32.mrf.mxu1  ;;  %v1420_v3 = vpop.f32.mrf.mxu0 }
 0x406   : > { %v1379_v53 = vmul.f32 %v1378_v63, %v1371_v1  ;;  %v1428_v5 = vmul.f32 %v1427_v0, %v1420_v3 }
 0x407   : > { %v2268_v9 = vpop.f32.mrf.mxu1  ;;  %v2274_v13 = vpop.f32.mrf.mxu0 }
 0x408   : > { %v1380_v16 = vadd.f32 %v1379_v53, %v1331_v10  ;;  %v2398_v13 = vld [vmem:[%s3014_s8] sm:$0xff]  }
 0x409   : > { %v1374_v17 = vpop.f32.mrf.mxu1  ;;  %v1423_v18 = vpop.f32.mrf.mxu0 }
 0x40a   : > { %v1429_v19 = vadd.f32 %v1428_v5, %v1380_v16  ;;  %v2397_v5 = vld [vmem:[%s3014_s8 + $0x8] sm:$0xff]  }
 0x40b   : > { %v2269_v20 = vpop.f32.mrf.mxu1  ;;  %v2275_v21 = vpop.f32.mrf.mxu0 }
 0x40d   : > { %v1469_v23 = vpop.f32.mrf.mxu1  ;;  %v1533_v24 = vpop.f32.mrf.mxu0 }
 0x40e   : > { %v1477_v27 = vmul.f32 %v1476_v22, %v1469_v23  ;;  %v1585_v28 = vmul.f32 0.35355338, %v1533_v24 }
 0x40f   : > { %v2280_v30 = vpop.f32.mrf.mxu1  ;;  %v2286_v31 = vpop.f32.mrf.mxu0 }
 0x410   : > { %v1478_v32 = vadd.f32 %v1477_v27, %v1429_v19  ;;  %v1593_v33 = vadd.f32 %v2113_v26, %v1585_v28  ;;  %v2926_v27 = vld [vmem:[%s3021_s15] sm:$0x3f] }
 0x411   : > { %v1472_v34 = vpop.f32.mrf.mxu1  ;;  %v1536_v35 = vpop.f32.mrf.mxu0  ;;  %v1730_v28 = vrot.slane %v2926_v27, %v2664_v6  ;;  %v2399_v6 = vld [vmem:[%s3015_s9 + $0x8] sm:$0xff]  }
 0x412   : > { %v1595_v36 = vsel %vm1492_vm12, %v1593_v33, -inf  ;;  %v2135_v57 = vpack.c.bf16 %v1478_v32, %v1478_v32 }
 0x413   : > { %1596 = vmax.xlane.f32.xlu1 %v1595_v36  ;;  %v2281_v37 = vpop.f32.mrf.mxu1  ;;  %v2287_v38 = vpop.f32.mrf.mxu0 }
 0x415   : > { %v1579_v39 = vpop.f32.mrf.mxu1 }
 0x416   : > { %v1586_v40 = vmul.f32 0.35355338, %v1579_v39 }
 0x417   : > { %v2292_v41 = vpop.f32.mrf.mxu1 }
 0x418   : > { %v1594_v42 = vadd.f32 %v2113_v26, %v1586_v40 }
 0x419   : > { %v1582_v43 = vpop.f32.mrf.mxu1 }
 0x41a   : > { %v1598_v44 = vsel %vm1492_vm12, %v1594_v42, -inf }
 0x41b   : > { %1599 = vmax.xlane.f32.xlu0 %v1598_v44  ;;  %v2293_v45 = vpop.f32.mrf.mxu1 }
 0x41c   : > { %v1804_v45 = vrot.slane %v2926_v27, %v2667_v7  ;;  %v2402_v7 = vld [vmem:[%s3016_s10 + $0x10] sm:$0xff]  }
 0x49c   : > { %v1597_v46 = vpop.xlane.xlu1 %1596 }
 0x49d   : > { %v1601_v56 = vsub.f32 %v1593_v33, %v1597_v46 }
 0x49f   : > { %v1603_v47 = vmul.f32 1.442695, %v1601_v56 }
 0x4a1   : > { %2409 = vpow2.f32 %v1603_v47  ;;  %v1809_v47 = vrot.slane %v2926_v27, %v2674_v8  ;;  %v2403_v8 = vld [vmem:[%s3016_s10 + $0x8] sm:$0xff]  }
 0x4a4   : > { %v1600_v48 = vpop.xlane.xlu0 %1599 }
 0x4a5   : > { %v1602_v49 = vsub.f32 %v1594_v42, %v1600_v48 }
 0x4a7   : > { %v1605_v50 = vmul.f32 1.442695, %v1602_v49 }
 0x4a9   : > { %2411 = vpow2.f32 %v1605_v50 }
 0x4ae   : > { %v2410_v51 = vpop.eup %2409 }
 0x4af   : > { %v1607_v52 = vsel %vm1492_vm12, %v2410_v51, 0.0 }
 0x4b0   : > { %1608 = vadd.xlane.f32.xlu1 %v1607_v52  ;;  %v2404_v52 = vld [vmem:[%s3016_s10] sm:$0xff]  }
 0x4b6   : > { %v2412_v54 = vpop.eup %2411 }
 0x4b7   : > { %v1610_v55 = vsel %vm1492_vm12, %v2412_v54, 0.0 }
 0x4b8   : > { %1611 = vadd.xlane.f32.xlu0 %v1610_v55 }
 0x4ce   : > { %801 = vrot.lane.b32.xlu0 %v2791_v29, %s2489_s29 }
 0x4d2   : > { %1483 = vrot.lane.b32.xlu0 %v2135_v57, %s2494_s21 }
 0x539   : > { %v1609_v58 = vpop.xlane.xlu1 %1608 }
 0x53a   : > { %2413 = vrcp.f32 %v1609_v58 }
 0x541   : > { %v1612_v59 = vpop.xlane.xlu0 %1611 }
 0x542   : > { %2415 = vrcp.f32 %v1612_v59 }
 0x545   : > { %v802_v60 = vpop.permute.xlu0 %801 }
 0x546   : > { %805 = vst.msk [vmem:[#allocation5 + $0x4] sm:$0xf] %vm776_vm8, %v802_v60 }
 0x547   : > { %v2414_v10 = vpop.eup %2413 }
 0x548   : > { %v1615_v61 = vmul.f32 %v2414_v10, %v2410_v51  ;;  %v2401_v51 = vld [vmem:[%s3016_s10 + $0x18] sm:$0xff]  }
 0x549   : > { %v1484_v62 = vpop.permute.xlu0 %1483 }
 0x54a   : > { %1487 = vst.msk [vmem:[#allocation2] sm:$0xf] %vm1486_vm14, %v1484_v62  ;;  %v1617_v63 = vpack.c.bf16 %v1615_v61, %v1615_v61 }
 0x54c   : > { %2297 = vmatmul.mubr.msk.bf16.vlgmr.msra.gmra.mxu0 %vm1492_vm12, %v1617_v63 }
 0x54d   : > { %v1620_v0 = vld [vmem:[#allocation5 + $0x4] sm:$0xf]  ;;  %2310 = vmatprep.mubr.msk.bf16.mxu0 %vm2486_vm0, %v2485_v2  ;;  %2307 = vmatpush3.bf16.msra.mxu0 %v2397_v5 }
 0x54e   : > { %v1672_v29 = vsel %vm1624_vm13, %v1620_v0, 0  ;;  %2308 = vmatprep.subr.bf16.mxu0 %v2485_v2 }
 0x54f   : > { %v2416_v1 = vpop.eup %2415  ;;  %2301 = vmatpush3.bf16.msra.mxu1 %v1672_v29  ;;  %v1895_v29 = vrot.slane %v2926_v27, %v2686_v11 }
 0x550   : > { %v1616_v3 = vmul.f32 %v2416_v1, %v2412_v54  ;;  %2314 = vmatprep.subr.bf16.mxu1 %v2485_v2  ;;  %v2119_v54 = vld [vmem:[%s3023_s17] ss:$0 sm:$0xff] }
 0x551   : > { %2309 = vmatpush3.bf16.msra.mxu0 %v2398_v13 }
 0x552   : > { %v1618_v53 = vpack.c.bf16 %v1616_v3, %v1616_v3  ;;  %2322 = vmatprep.subr.bf16.mxu0 %v2485_v2 }
 0x554   : > { %2303 = vmatmul.mubr.msk.bf16.vlgmr.msra.gmra.mxu1 %vm1492_vm12, %v1618_v53 }
 0x555   : > { %2318 = vmatprep.mubr.msk.bf16.mxu1 %vm2486_vm0, %v2485_v2  ;;  %2315 = vmatpush3.bf16.msra.mxu1 %v2399_v6 }
 0x556   : > { %2316 = vmatprep.subr.bf16.mxu1 %v2485_v2 }
 0x60c   : > { %v1662_v9 = vpop.f32.mrf.mxu0 }
 0x60e   : > { %v2298_v15 = vpop.f32.mrf.mxu0 }
 0x610   : > { %v1665_v16 = vpop.f32.mrf.mxu0 }
 0x612   : > { %v2299_v17 = vpop.f32.mrf.mxu0 }
 0x614   : > { %v1708_v18 = vpop.f32.mrf.mxu1 }
 0x615   : > { %1715 = vrot.lane.b32.xlu1 %v1708_v18, %s2495_s22  ;;  %s2077_s22 = sshll.u32 %s575_s25, 2 }
 0x616   : > { %v2304_v19 = vpop.f32.mrf.mxu1  ;;  %s577_s26 = scalar_lea.vmem [#allocation6], %s2077_s22 }
 0x617   : > { %s2005_s24 = sshll.u32 %s577_s26, 4  ;;  %s2006_s24 = int_to_ptr.vmem [resolvable:$true] %s2005_s24 }
 0x618   : > { %v1711_v20 = vpop.f32.mrf.mxu1  ;;  %s2423_s3 = scalar_lea.vmem %s2006_s24, 64  ;;  %p2430_p0 = scmp.lt.s32.totalorder %s2006_s24, %s2428_s5 }
 0x619   : > { %p2424_p11 = scmp.ne.s32.totalorder %s2006_s24, %s2423_s3  ;;  %p2431_p1 = scmp.lt.s32.totalorder %s2429_s0, %s2423_s3 }
 0x61a   : > { %v2305_v21 = vpop.f32.mrf.mxu1 }
 0x61b   : > { %p2425_p12 = pnand %p2424_p11, %p2630_p5  ;;  %p2432_p2 = por %p2431_p1, %p2430_p0 }
 0x61d   : > { %p2426_p13 = pneg %p2425_p12 }
 0x61f   : > { %p2433_p3 = pnand %p2432_p2, %p2426_p13 }
 0x687   : > { %v1716_v22 = vpop.permute.xlu1 %1715 }
 0x688   : > { %v1718_v23 = vsel %vm1492_vm12, %v1662_v9, %v1716_v22 }
 0x689   : > { %v1719_v24 = vpack.c.bf16 %v1718_v23, %v1718_v23  ;;  %v1981_v23 = vrot.slane %v2926_v27, %v2699_v14 }
 0x68b   : > { %1721 = vst.msk [vmem:[#allocation2] sm:$0xf] %vm1720_vm15, %v1719_v24 }
 0x692   : > { %v1722_v26 = vld [vmem:[#allocation2] sm:$0xf] }
 0x693   : > { %2311 = vmatmul.mubr.msk.bf16.vlgmr.msra.gmra.mxu0 %vm611_vm1, %v1722_v26 }
 0x694   : > { %2330 = vmatprep.mubr.msk.bf16.mxu0 %vm2486_vm0, %v2485_v2  ;;  %2323 = vmatpush3.bf16.msra.mxu0 %v2401_v51  ;;  %vm1920_vm0 = vcmask 523264  }
 0x695   : > { %2324 = vmatprep.subr.bf16.mxu0 %v2485_v2 }
 0x698   : > { %2325 = vmatpush3.bf16.msra.mxu0 %v2402_v7 }
 0x699   : > { %2326 = vmatprep.subr.bf16.mxu0 %v2485_v2 }
 0x69c   : > { %2327 = vmatpush3.bf16.msra.mxu0 %v2403_v8 }
 0x69d   : > { %2328 = vmatprep.subr.bf16.mxu0 %v2485_v2 }
 0x6a0   : > { %2329 = vmatpush3.bf16.msra.mxu0 %v2404_v52 }
 0x753   : > { %v1780_v30 = vpop.f32.mrf.mxu0 }
 0x754   : > { %v1781_v31 = vadd.f32 %v1780_v30, %v1730_v28  ;;  %v1986_v28 = vrot.slane %v2926_v27, %v866_v25 }
 0x755   : > { %v2312_v32 = vpop.f32.mrf.mxu0 }
 0x756   : > { %v1786_v33 = vadd.f32 %v1781_v31, %v2689_v12  ;;  %v2400_v12 = vld [vmem:[%s3015_s9] sm:$0xff]  }
 0x757   : > { %v1783_v34 = vpop.f32.mrf.mxu0  ;;  %2317 = vmatpush3.bf16.msra.mxu1 %v2400_v12 }
 0x758   : > { %v1787_v35 = vsel %vm611_vm1, %v1786_v33, 0.0 }
 0x759   : > { %1788 = vadd.xlane.f32.xlu1 %v1787_v35  ;;  %v2313_v36 = vpop.f32.mrf.mxu0 }
 0x7e2   : > { %v1789_v37 = vpop.xlane.xlu1 %1788 }
 0x7e3   : > { %v1791_v38 = vmul.f32 0.03125, %v1789_v37 }
 0x7e5   : > { %v1792_v39 = vsub.f32 %v1786_v33, %v1791_v38 }
 0x7e7   : > { %v1793_v40 = vmul.f32 %v1792_v39, %v1792_v39 }
 0x7e9   : > { %v1794_v41 = vsel %vm611_vm1, %v1793_v40, 0.0 }
 0x7ea   : > { %1795 = vadd.xlane.f32.xlu0 %v1794_v41 }
 0x873   : > { %v1796_v42 = vpop.xlane.xlu0 %1795 }
 0x874   : > { %v1797_v43 = vmul.f32 0.03125, %v1796_v42 }
 0x876   : > { %v1798_v44 = vadd.f32 1e-12, %v1797_v43 }
 0x878   : > { %2417 = vrsqrt.f32 %v1798_v44 }
 0x885   : > { %v2418_v46 = vpop.eup %2417 }
 0x886   : > { %v1800_v56 = vmul.f32 %v2418_v46, %v1792_v39 }
 0x888   : > { %v1805_v48 = vmul.f32 %v1804_v45, %v1800_v56 }
 0x88a   : > { %v1810_v49 = vadd.f32 %v1809_v47, %v1805_v48 }
 0x88c   : > { %v1811_v50 = vpack.c.bf16 %v1810_v49, %v1810_v49 }
 0x88e   : > { %2319 = vmatmul.mubr.msk.bf16.vlgmr.msra.gmra.mxu1 %vm611_vm1, %v1811_v50 }
 0x94e   : > { %v1872_v55 = vpop.f32.mrf.mxu1 }
 0x94f   : > { %v1873_v57 = vadd.f32 %v2119_v54, %v1872_v55 }
 0x950   : > { %v2320_v58 = vpop.f32.mrf.mxu1 }
 0x951   : > { %v1879_v59 = vmul.f32 0.70710677, %v1873_v57  ;;  %v1878_v62 = vmul.f32 0.5, %v1873_v57 }
 0x952   : > { %v1875_v60 = vpop.f32.mrf.mxu1 }
 0x953   : > { %2419 = verf.f32 %v1879_v59 }
 0x954   : > { %v2321_v10 = vpop.f32.mrf.mxu1 }
 0x960   : > { %v2420_v61 = vpop.eup %2419 }
 0x961   : > { %v1881_v63 = vadd.f32 1.0, %v2420_v61 }
 0x963   : > { %v1882_v2 = vmul.f32 %v1881_v63, %v1878_v62 }
 0x965   : > { %v1883_v0 = vpack.c.bf16 %v1882_v2, %v1882_v2 }
 0x967   : > { %2331 = vmatmul.mubr.msk.bf16.vlgmr.msra.gmra.mxu0 %vm1920_vm0, %v1883_v0 }
 0xa27   : > { %v1958_v1 = vpop.f32.mrf.mxu0 }
 0xa28   : > { %v1959_v3 = vadd.f32 %v1958_v1, %v1895_v29 }
 0xa29   : > { %v2332_v53 = vpop.f32.mrf.mxu0 }
 0xa2a   : > { %v1964_v5 = vadd.f32 %v1959_v3, %v1810_v49 }
 0xa2b   : > { %v1961_v9 = vpop.f32.mrf.mxu0 }
 0xa2c   : > { %v1965_v13 = vsel %vm611_vm1, %v1964_v5, 0.0 }
 0xa2d   : > { %1966 = vadd.xlane.f32.xlu0 %v1965_v13  ;;  %v2333_v15 = vpop.f32.mrf.mxu0 }
 0xab6   : > { %v1967_v16 = vpop.xlane.xlu0 %1966 }
 0xab7   : > { %v1968_v17 = vmul.f32 0.03125, %v1967_v16 }
 0xab9   : > { %v1969_v18 = vsub.f32 %v1964_v5, %v1968_v17 }
 0xabb   : > { %v1970_v19 = vmul.f32 %v1969_v18, %v1969_v18 }
 0xabd   : > { %v1971_v20 = vsel %vm611_vm1, %v1970_v19, 0.0  ;;  %vm1989_vm1 = vcmask 257024  }
 0xabe   : > { %1972 = vadd.xlane.f32.xlu1 %v1971_v20 }
 0xb47   : > { %v1973_v21 = vpop.xlane.xlu1 %1972 }
 0xb48   : > { %v1974_v11 = vmul.f32 0.03125, %v1973_v21 }
 0xb4a   : > { %v1975_v22 = vadd.f32 1e-12, %v1974_v11 }
 0xb4c   : > { %2421 = vrsqrt.f32 %v1975_v22 }
 0xb59   : > { %v2422_v24 = vpop.eup %2421 }
 0xb5a   : > { %v1977_v26 = vmul.f32 %v2422_v24, %v1969_v18 }
 0xb5c   : > { %v1982_v30 = vmul.f32 %v1981_v23, %v1977_v26 }
 0xb5e   : > { %v1987_v31 = vadd.f32 %v1986_v28, %v1982_v30 }
 0xb60   : > { %v1988_v32 = vpack.c.bf16 %v1987_v31, %v1987_v31 }
 0xb62   : > { %1990 = vst.msk [vmem:[%s577_s26] sm:$0xf] %vm1989_vm1, %v1988_v32 }
 0xb63   : > { %2436 = shalt.err (!%p2433_p3)
}
 0xb64   : > { %s2437_s22 = scalar_lea.hbm %s2003_s19, 64  ;;  %s2441_s26 = scalar_lea.hbm %s3024_s18, 128 }
 0xb65   : > { %p2438_p4 = scmp.ne.s32.totalorder %s2003_s19, %s2437_s22  ;;  %p2442_p9 = scmp.lt.s32.totalorder %s2003_s19, %s3024_s18 }
 0xb66   : > { %p2443_p10 = scmp.lt.s32.totalorder %s2441_s26, %s2437_s22 }
 0xb67   : > { %p2439_p7 = pnand %p2438_p4, %p2630_p5 }
 0xb68   : > { %p2444_p11 = por %p2443_p10, %p2442_p9 }
 0xb69   : > { %p2440_p8 = pneg %p2439_p7 }
 0xb6b   : > { %p2445_p12 = pnand %p2444_p11, %p2440_p8 }
 0xb6d   : > { %2448 = shalt.err (!%p2445_p12)
}
 0xb6e   : > { %2334 = dma.vmem_to_hbm [thread:$0]  (%p2630_p5), %s2006_s24, 64, %s2003_s19, %s1992_s20  }
 0xb6f PF: > { %p2340_p13 = scmp.ge.s32.totalorder %s2483_s30, 2  ;;  %s2017_s3 = sand.u32 1, %s2471_s27  }
 0xb70   : > { %s2018_s4 = scalar_lea.sflag [#allocation7], %s2017_s3 }
 0xb71   : > { %p2337_p0 = pnand %p2340_p13, %p2634_p6 }
 0xb73   : > { %p2338_p1 = pneg %p2337_p0 }
 0xb75   : > { %2466 = dma.done.wait (%p2338_p1), %s2018_s4, 64  }
 0xb76   : > { %2468 = vsyncadd (%p2338_p1), %s2018_s4, 4294967232  ;;  %s3047_s30 = sld [smem:[#allocation10_spill]]  ;;  %s3050_s27 = smov %s2475_s28 }
 0xb77   : > { %s3048_s5 = sld [smem:[#allocation9_spill]] }
 0xb78   : > { %s3049_s29 = sld [smem:[#allocation11_spill]] }
 0xb7c   : > { %p28_p2 = scmp.ge.s32.totalorder %s3047_s30, 4  }
 0xb7d   : > { %s3051_s28 = smov %s3048_s5 }
 0xb7e   :  { %30 = sbr.rel (!%p28_p2) target bundleno = 10 (0xa), region = 133 }
 0xb83   :  { %2023 = vsyncpa [#allocation7], 1 }
 0xb84   :  { %2025 = vsyncpa [#allocation7 + $0x1], 1 }

</bundles_post_ra>
